<compile_context>
chip_gen: v5e
topology: v5e:2x2
jax: 0.10.0
libtpu: 0.0.40
codegen_flags: <defaults>
</compile_context>

<pallas_src>
import functools
import math

import jax
import jax.numpy as jnp
from jax import lax
from jax.experimental import pallas as pl
from jax.experimental.pallas import tpu as pltpu


# ---------------------------------------------------------------------------
# Packed small-param layout: one f32 array per synapse, fields at 128-aligned lane offsets
# ---------------------------------------------------------------------------
def _round128(n):
    return ((n + 127) // 128) * 128


def _packed_layout(d, nhead, head_dim, dim_ff):
    off, cur = {}, 0

    def alloc(name, n):
        nonlocal cur
        off[name] = cur
        cur += _round128(n)

    for h in range(nhead):
        alloc(f"bq{h}", head_dim)
        alloc(f"bk{h}", head_dim)
        alloc(f"bv{h}", head_dim)
    alloc("bo", d)
    alloc("n1_w", d)
    alloc("n1_b", d)
    alloc("b1", dim_ff)
    alloc("b2", d)
    alloc("fc_b", d)      # norm2 affine already folded in
    alloc("norm_w", d)    # shared outer LayerNorm (replicated per synapse)
    alloc("norm_b", d)
    return off, cur


# ---------------------------------------------------------------------------
# In-kernel helpers (pure jnp, traced inside the Pallas body; all f32)
# ---------------------------------------------------------------------------
def _normalize(x, eps=1e-5):
    mu = jnp.mean(x, axis=-1, keepdims=True)
    var = jnp.mean((x - mu) ** 2, axis=-1, keepdims=True)
    return (x - mu) * lax.rsqrt(var + eps)


def _softmax(x, axis):
    m = jnp.max(x, axis=axis, keepdims=True)
    e = jnp.exp(x - m)
    # exact divide: rows sum to 1 to f32 precision (perf review correctness item)
    return e / jnp.sum(e, axis=axis, keepdims=True)


# ---------------------------------------------------------------------------
# Fused kernel: one grid step == one synapse
#   LayerNorm(self.norm) -> MHA -> add&norm1 -> FFN -> add&norm2(fold) -> fc -> softmax(dim=1)
# x lives in a VMEM scratch across grid steps; weights are bf16 in (in, out) layout.
# ---------------------------------------------------------------------------
def fused_synapse_kernel(x_ref, wqkv_ref, wo_ref, w1_ref, w2_ref, fcw_ref, pk_ref,
                         states_ref, x_vmem, *, nhead, head_dim, off):
    i = pl.program_id(0)

    @pl.when(i == 0)
    def _():
        x_vmem[...] = x_ref[...]

    d = nhead * head_dim
    dim_ff = w1_ref.shape[1]
    x = x_vmem[...]                                   # (S, d) f32
    S = x.shape[0]

    def fld(name, n):
        o = off[name]                                 # static, 128-lane-aligned
        return pk_ref[:, o:o + n]                     # (1, n) f32

    # ---- outer self.norm (shared nn.LayerNorm(output_dim)); affine kept: output reused in residual
    x = _normalize(x) * fld("norm_w", d) + fld("norm_b", d)
    xb = x.astype(jnp.bfloat16)

    # ---- multi-head self-attention (Q = K = V = x), post-norm encoder layer ----
    scale = 1.0 / math.sqrt(head_dim)
    attn = jnp.zeros((S, d), jnp.float32)
    for h in range(nhead):                            # static python loop (tiny nhead)
        # per-head projections from pre-split weights: outputs start at lane 0 (no lane extracts)
        q = jnp.dot(xb, wqkv_ref[3 * h + 0],
                    preferred_element_type=jnp.float32) + fld(f"bq{h}", head_dim)
        k = jnp.dot(xb, wqkv_ref[3 * h + 1],
                    preferred_element_type=jnp.float32) + fld(f"bk{h}", head_dim)
        v = jnp.dot(xb, wqkv_ref[3 * h + 2],
                    preferred_element_type=jnp.float32) + fld(f"bv{h}", head_dim)
        # scores: contract on head_dim of both operands (no transpose needed)
        s = lax.dot_general(q.astype(jnp.bfloat16), k.astype(jnp.bfloat16),
                            (((1,), (1,)), ((), ())),
                            preferred_element_type=jnp.float32) * scale   # (S, S)
        p = _softmax(s, axis=-1)
        ctx = jnp.dot(p.astype(jnp.bfloat16), v.astype(jnp.bfloat16),
                      preferred_element_type=jnp.float32)                 # (S, hd)
        # fold the per-head slice of the output projection (exact: equals concat @ Wo)
        attn = attn + jnp.dot(ctx.astype(jnp.bfloat16), wo_ref[h],
                              preferred_element_type=jnp.float32)
    attn = attn + fld("bo", d)

    # ---- residual + norm1 (dropout = identity, eval semantics); affine kept: output reused
    x = _normalize(x + attn) * fld("n1_w", d) + fld("n1_b", d)

    # ---- feed-forward: linear2(relu(linear1(x))) ----
    h1 = jnp.maximum(
        jnp.dot(x.astype(jnp.bfloat16), w1_ref[...],
                preferred_element_type=jnp.float32) + fld("b1", dim_ff), 0.0)
    ff = jnp.dot(h1.astype(jnp.bfloat16), w2_ref[...],
                 preferred_element_type=jnp.float32) + fld("b2", d)

    # ---- residual + norm2; norm2's affine is folded into fc_w / fc_b in the wrapper ----
    xh = _normalize(x + ff)

    # ---- fc: Linear(input_dim, output_dim) (with diag(n2_w) @ W and n2_b @ W + b pre-folded) ----
    y = jnp.dot(xh.astype(jnp.bfloat16), fcw_ref[...],
                preferred_element_type=jnp.float32) + fld("fc_b", d)

    # ---- nn.Softmax(dim=1) over features of the (S, d) matrix ----
    out = _softmax(y, axis=1)

    x_vmem[...] = out          # carry x to the next synapse (stays in VMEM)
    states_ref[...] = out      # mimics `neuron.states.data = x`


# ---------------------------------------------------------------------------
# Parameter construction (deterministic; torch-like logical layout, all f32)
# ---------------------------------------------------------------------------
def init_params(key, neuron_count, num_states, d_model, dim_ff):
    NC, d, f = neuron_count, d_model, dim_ff
    ks = jax.random.split(key, 18)

    def dense(k, shape, fan_in):
        return jax.random.normal(k, shape, jnp.float32) / jnp.sqrt(jnp.float32(fan_in))

    return {
        # shared self.norm = nn.LayerNorm(output_dim) (perturbed from 1/0 so the
        # packing / folding code paths are genuinely exercised)
        "norm_w": 1.0 + 0.1 * jax.random.normal(ks[0], (d,), jnp.float32),
        "norm_b": 0.05 * jax.random.normal(ks[1], (d,), jnp.float32),
        # Neuron.states = nn.Parameter(torch.randn(num_states))
        "neuron_states": [jax.random.normal(k, (num_states,), jnp.float32)
                          for k in jax.random.split(ks[2], NC)],
        # MultiheadAttention projections ((in, out) layout)
        "wqkv": dense(ks[3], (NC, d, 3 * d), d),
        "bqkv": 0.02 * jax.random.normal(ks[4], (NC, 3 * d), jnp.float32),
        "wo":   dense(ks[5], (NC, d, d), d),
        "bo":   0.02 * jax.random.normal(ks[6], (NC, d), jnp.float32),
        # TransformerEncoderLayer norms
        "n1_w": 1.0 + 0.1 * jax.random.normal(ks[7], (NC, d), jnp.float32),
        "n1_b": 0.05 * jax.random.normal(ks[8], (NC, d), jnp.float32),
        "n2_w": 1.0 + 0.1 * jax.random.normal(ks[9], (NC, d), jnp.float32),
        "n2_b": 0.05 * jax.random.normal(ks[10], (NC, d), jnp.float32),
        # FFN (dim_feedforward = 2048, PyTorch default)
        "w1":   dense(ks[11], (NC, d, f), d),
        "b1":   0.02 * jax.random.normal(ks[12], (NC, f), jnp.float32),
        "w2":   dense(ks[13], (NC, f, d), f),
        "b2":   0.02 * jax.random.normal(ks[14], (NC, d), jnp.float32),
        # TransformerLayer.fc = nn.Linear(input_dim, output_dim)
        "fc_w": dense(ks[15], (NC, d, d), d),
        "fc_b": 0.02 * jax.random.normal(ks[16], (NC, d), jnp.float32),
    }


# ---------------------------------------------------------------------------
# One-time layout plumbing (wrapper side): per-head weight split, norm2->fc fold,
# bf16 cast, and packing of all small params into one 128-aligned f32 array.
# ---------------------------------------------------------------------------
def prepare_params(params, *, nhead):
    NC, d, _ = params["wqkv"].shape
    hd = d // nhead
    f = params["w1"].shape[-1]
    NS = NC - 1                      # zip(self.neurons[:-1], self.synapses)
    off, P = _packed_layout(d, nhead, hd, f)

    wqkv = params["wqkv"][:NS]       # (NS, d, 3d) f32, columns [Q | K | V]
    bqkv = params["bqkv"][:NS]       # (NS, 3d)

    # per-head q/k/v projection weights -> (NS, 3*nhead, d, hd) bf16
    blocks = []
    for h in range(nhead):
        for w in range(3):
            lo = w * d + h * hd
            blocks.append(wqkv[:, :, lo:lo + hd])
    wqkv_heads = jnp.stack(blocks, axis=1).astype(jnp.bfloat16)

    # per-head output projection -> (NS, nhead, hd, d) bf16
    wo = params["wo"][:NS]
    wo_heads = jnp.stack([wo[:, h * hd:(h + 1) * hd, :] for h in range(nhead)],
                         axis=1).astype(jnp.bfloat16)

    w1 = params["w1"][:NS].astype(jnp.bfloat16)
    w2 = params["w2"][:NS].astype(jnp.bfloat16)

    # fold norm2's affine into fc (exact: norm2's output feeds only fc)
    n2w, n2b = params["n2_w"][:NS], params["n2_b"][:NS]
    fcw = params["fc_w"][:NS]
    fcw_folded = (n2w[:, :, None] * fcw).astype(jnp.bfloat16)
    fcb_folded = jnp.einsum("nd,ndo->no", n2b, fcw) + params["fc_b"][:NS]

    # one packed (NS, 1, P) f32 array for all per-step small params
    packed = jnp.zeros((NS, P), jnp.float32)

    def put(pk, name, arr2d):
        o = off[name]
        return pk.at[:, o:o + arr2d.shape[1]].set(arr2d)

    for h in range(nhead):
        packed = put(packed, f"bq{h}", bqkv[:, 0 * d + h * hd: 0 * d + (h + 1) * hd])
        packed = put(packed, f"bk{h}", bqkv[:, 1 * d + h * hd: 1 * d + (h + 1) * hd])
        packed = put(packed, f"bv{h}", bqkv[:, 2 * d + h * hd: 2 * d + (h + 1) * hd])
    packed = put(packed, "bo", params["bo"][:NS])
    packed = put(packed, "n1_w", params["n1_w"][:NS])
    packed = put(packed, "n1_b", params["n1_b"][:NS])
    packed = put(packed, "b1", params["b1"][:NS])
    packed = put(packed, "b2", params["b2"][:NS])
    packed = put(packed, "fc_b", fcb_folded)
    packed = put(packed, "norm_w", jnp.broadcast_to(params["norm_w"][None, :], (NS, d)))
    packed = put(packed, "norm_b", jnp.broadcast_to(params["norm_b"][None, :], (NS, d)))
    packed = packed.reshape(NS, 1, P)

    return {"wqkv_heads": wqkv_heads, "wo_heads": wo_heads, "w1": w1, "w2": w2,
            "fc_w": fcw_folded, "packed": packed,
            "nhead": nhead, "head_dim": hd, "off": off, "P": P, "NS": NS}


# ---------------------------------------------------------------------------
# NNTransformer.forward equivalent (single fused pallas_call over all synapses)
# ---------------------------------------------------------------------------
def nn_transformer_forward(x, prep, neuron_states):
    S, d = x.shape
    nhead, hd, NS = prep["nhead"], prep["head_dim"], prep["NS"]
    dim_ff = prep["w1"].shape[-1]

    syn_arrays = [prep["wqkv_heads"], prep["wo_heads"], prep["w1"], prep["w2"],
                  prep["fc_w"], prep["packed"]]

    def stacked_spec(a):
        nd = a.ndim
        # select synapse i via the (squeezed) leading axis; trailing dims = full array
        return pl.BlockSpec((None,) + tuple(a.shape[1:]),
                            lambda i, _nd=nd: (i,) + (0,) * (_nd - 1))

    in_specs = ([pl.BlockSpec((S, d), lambda i: (0, 0))]
                + [stacked_spec(a) for a in syn_arrays])
    out_spec = pl.BlockSpec((None, S, d), lambda i: (i, 0, 0))

    # advisory cost estimate (per-synapse flops x NS)
    flops = NS * (2 * S * d * 3 * d                           # qkv projections (per-head split)
                  + nhead * (4 * S * S * hd)                  # scores + ctx
                  + nhead * (2 * S * hd * d)                  # out proj (per-head folded)
                  + 4 * S * d * dim_ff                        # ffn
                  + 2 * S * d * d)                            # fc
    trans = NS * (nhead * S * S + S * d + 4 * S)
    bytes_acc = (sum(int(a.size) * a.dtype.itemsize for a in syn_arrays)
                 + x.size * 4 + NS * S * d * 4)

    kernel = functools.partial(fused_synapse_kernel,
                               nhead=nhead, head_dim=hd, off=prep["off"])
    states_x = pl.pallas_call(
        kernel,
        out_shape=jax.ShapeDtypeStruct((NS, S, d), jnp.float32),
        grid_spec=pltpu.PrefetchScalarGridSpec(
            num_scalar_prefetch=0,
            grid=(NS,),
            in_specs=in_specs,
            out_specs=out_spec,
            scratch_shapes=[pltpu.VMEM((S, d), jnp.float32)]),
        compiler_params=pltpu.CompilerParams(
            dimension_semantics=("arbitrary",),     # synapse chain is sequential (VMEM carry)
            vmem_limit_bytes=32 * 1024 * 1024),     # w2 lane-pads to ~512 KiB/buf; plenty of room
        cost_estimate=pl.CostEstimate(flops=int(flops), transcendentals=int(trans),
                                      bytes_accessed=int(bytes_acc)),
    )(x, *syn_arrays)

    # mimic `neuron.states.data = x` (functional): first NS states replaced, last untouched
    states = [states_x[i] for i in range(NS)] + [neuron_states[-1]]
    # Module returns the LAST neuron's states parameter (never updated in the loop).
    return neuron_states[-1], states_x[-1], states


if __name__ == "__main__":
    # Small shapes consistent with the module: neuron_count=3, num_states=10,
    # input_dim = output_dim = d_model = 32, nhead = 2, seq = 8, dim_feedforward = 2048 (default).
    neuron_count, num_states = 3, 10
    d_model, nhead, dim_ff = 32, 2, 2048
    seq = 8

    key = jax.random.PRNGKey(0)
    kx, kp = jax.random.split(key)
    x = jax.random.normal(kx, (seq, d_model), jnp.float32)
    params = init_params(kp, neuron_count, num_states, d_model, dim_ff)
    prep = prepare_params(params, nhead=nhead)

    out, last_x, all_states = nn_transformer_forward(x, prep, params["neuron_states"])
    jax.block_until_ready((out, last_x))

    assert out.shape == (num_states,)
    assert last_x.shape == (seq, d_model)
    assert bool(jnp.all(jnp.isfinite(last_x)))
    # rows of last_x are softmax distributions over features (dim=1); exact divide -> tight tol
    assert bool(jnp.allclose(jnp.sum(last_x, axis=1), 1.0, atol=1e-4))
    print("KERNEL_OK")
</pallas_src>

<mosaic_0001>
module attributes {stable_mosaic.version = 11 : i64} {
  func.func @fused_synapse_kernel(%arg0: i32, %arg1: memref<8x32xf32, #tpu.memory_space<vmem>>, %arg2: memref<1x6x32x16xbf16, #tpu.memory_space<vmem>>, %arg3: memref<1x2x16x32xbf16, #tpu.memory_space<vmem>>, %arg4: memref<1x32x2048xbf16, #tpu.memory_space<vmem>>, %arg5: memref<1x2048x32xbf16, #tpu.memory_space<vmem>>, %arg6: memref<1x32x32xbf16, #tpu.memory_space<vmem>>, %arg7: memref<1x1x3712xf32, #tpu.memory_space<vmem>>, %arg8: memref<1x8x32xf32, #tpu.memory_space<vmem>>, %arg9: memref<8x32xf32, #tpu.memory_space<vmem>>) attributes {dimension_semantics = [#tpu.dimension_semantics<arbitrary>], iteration_bounds = array<i64: 2>, scalar_prefetch = 0 : i64, scratch_operands = 1 : i64, tpu.core_type = #tpu.core_type<tc>, window_params = [{pipeline_mode = #tpu.pipeline_mode<synchronous>, transform_indices = @transform_0, window_bounds = array<i64: 8, 32>}, {transform_indices = @transform_1, window_bounds = array<i64: 1, 6, 32, 16>}, {transform_indices = @transform_2, window_bounds = array<i64: 1, 2, 16, 32>}, {transform_indices = @transform_3, window_bounds = array<i64: 1, 32, 2048>}, {transform_indices = @transform_4, window_bounds = array<i64: 1, 2048, 32>}, {transform_indices = @transform_5, window_bounds = array<i64: 1, 32, 32>}, {transform_indices = @transform_6, window_bounds = array<i64: 1, 1, 3712>}, {transform_indices = @transform_7, window_bounds = array<i64: 1, 8, 32>}]} {
    %c0_i32 = arith.constant 0 : i32
    %0 = arith.cmpi eq, %arg0, %c0_i32 : i32
    %1 = arith.extui %0 : i1 to i32
    %c0_i32_0 = arith.constant 0 : i32
    %2 = arith.cmpi ne, %1, %c0_i32_0 : i32
    scf.if %2 {
      %c0_111 = arith.constant 0 : index
      %c0_112 = arith.constant 0 : index
      %207 = vector.load %arg1[%c0_111, %c0_112] : memref<8x32xf32, #tpu.memory_space<vmem>>, vector<8x32xf32>
      %c0_113 = arith.constant 0 : index
      %c0_114 = arith.constant 0 : index
      %208 = vector.load %arg9[%c0_113, %c0_114] : memref<8x32xf32, #tpu.memory_space<vmem>>, vector<8x32xf32>
      tpu.vector_store %arg9[%c0_113, %c0_114], %207 {strides = array<i32>} : memref<8x32xf32, #tpu.memory_space<vmem>>, vector<8x32xf32>,
    } else {
    }
    %c0 = arith.constant 0 : index
    %c0_1 = arith.constant 0 : index
    %3 = vector.load %arg9[%c0, %c0_1] : memref<8x32xf32, #tpu.memory_space<vmem>>, vector<8x32xf32>
    %cst = arith.constant dense<0.000000e+00> : vector<8xf32>
    %4 = vector.multi_reduction <add>, %3, %cst [1] : vector<8x32xf32> to vector<8xf32>
    %5 = vector.shape_cast %4 : vector<8xf32> to vector<8x1xf32>
    %cst_2 = arith.constant 3.200000e+01 : f32
    %6 = vector.broadcast %cst_2 : f32 to vector<8x1xf32>
    %7 = arith.divf %5, %6 : vector<8x1xf32>
    %8 = vector.broadcast %7 : vector<8x1xf32> to vector<8x32xf32>
    %9 = arith.subf %3, %8 : vector<8x32xf32>
    %10 = arith.mulf %9, %9 : vector<8x32xf32>
    %cst_3 = arith.constant dense<0.000000e+00> : vector<8xf32>
    %11 = vector.multi_reduction <add>, %10, %cst_3 [1] : vector<8x32xf32> to vector<8xf32>
    %12 = vector.shape_cast %11 : vector<8xf32> to vector<8x1xf32>
    %cst_4 = arith.constant 3.200000e+01 : f32
    %13 = vector.broadcast %cst_4 : f32 to vector<8x1xf32>
    %14 = arith.divf %12, %13 : vector<8x1xf32>
    %15 = vector.broadcast %7 : vector<8x1xf32> to vector<8x32xf32>
    %16 = arith.subf %3, %15 : vector<8x32xf32>
    %cst_5 = arith.constant 9.99999974E-6 : f32
    %17 = vector.broadcast %cst_5 : f32 to vector<8x1xf32>
    %18 = arith.addf %14, %17 : vector<8x1xf32>
    %19 = math.rsqrt %18 : vector<8x1xf32>
    %20 = vector.broadcast %19 : vector<8x1xf32> to vector<8x32xf32>
    %21 = arith.mulf %16, %20 : vector<8x32xf32>
    %c0_6 = arith.constant 0 : index
    %c0_7 = arith.constant 0 : index
    %c3456 = arith.constant 3456 : index
    %22 = vector.load %arg7[%c0_6, %c0_7, %c3456] : memref<1x1x3712xf32, #tpu.memory_space<vmem>>, vector<1x1x32xf32>
    %23 = vector.shape_cast %22 : vector<1x1x32xf32> to vector<1x32xf32>
    %24 = vector.broadcast %23 : vector<1x32xf32> to vector<8x32xf32>
    %25 = arith.mulf %21, %24 : vector<8x32xf32>
    %c0_8 = arith.constant 0 : index
    %c0_9 = arith.constant 0 : index
    %c3584 = arith.constant 3584 : index
    %26 = vector.load %arg7[%c0_8, %c0_9, %c3584] : memref<1x1x3712xf32, #tpu.memory_space<vmem>>, vector<1x1x32xf32>
    %27 = vector.shape_cast %26 : vector<1x1x32xf32> to vector<1x32xf32>
    %28 = vector.broadcast %27 : vector<1x32xf32> to vector<8x32xf32>
    %29 = arith.addf %25, %28 : vector<8x32xf32>
    %30 = arith.truncf %29 : vector<8x32xf32> to vector<8x32xbf16>
    %cst_10 = arith.constant 0.000000e+00 : f32
    %31 = vector.broadcast %cst_10 : f32 to vector<8x32xf32>
    %c0_11 = arith.constant 0 : index
    %c0_12 = arith.constant 0 : index
    %c0_13 = arith.constant 0 : index
    %c0_14 = arith.constant 0 : index
    %32 = vector.load %arg2[%c0_11, %c0_12, %c0_13, %c0_14] : memref<1x6x32x16xbf16, #tpu.memory_space<vmem>>, vector<1x1x32x16xbf16>
    %33 = vector.shape_cast %32 : vector<1x1x32x16xbf16> to vector<32x16xbf16>
    %cst_15 = arith.constant dense<0.000000e+00> : vector<8x16xf32>
    %34 = tpu.matmul %30, %33, %cst_15 {dimension_numbers = #tpu.dot_dimension_numbers<[1], [0], [0], [1], [0, 0, 1, 1], [], []>} : vector<8x32xbf16>, vector<32x16xbf16>, vector<8x16xf32> -> vector<8x16xf32>
    %c0_16 = arith.constant 0 : index
    %c0_17 = arith.constant 0 : index
    %c0_18 = arith.constant 0 : index
    %35 = vector.load %arg7[%c0_16, %c0_17, %c0_18] : memref<1x1x3712xf32, #tpu.memory_space<vmem>>, vector<1x1x16xf32>
    %36 = vector.shape_cast %35 : vector<1x1x16xf32> to vector<1x16xf32>
    %37 = vector.broadcast %36 : vector<1x16xf32> to vector<8x16xf32>
    %38 = arith.addf %34, %37 : vector<8x16xf32>
    %c0_19 = arith.constant 0 : index
    %c1 = arith.constant 1 : index
    %c0_20 = arith.constant 0 : index
    %c0_21 = arith.constant 0 : index
    %39 = vector.load %arg2[%c0_19, %c1, %c0_20, %c0_21] : memref<1x6x32x16xbf16, #tpu.memory_space<vmem>>, vector<1x1x32x16xbf16>
    %40 = vector.shape_cast %39 : vector<1x1x32x16xbf16> to vector<32x16xbf16>
    %cst_22 = arith.constant dense<0.000000e+00> : vector<8x16xf32>
    %41 = tpu.matmul %30, %40, %cst_22 {dimension_numbers = #tpu.dot_dimension_numbers<[1], [0], [0], [1], [0, 0, 1, 1], [], []>} : vector<8x32xbf16>, vector<32x16xbf16>, vector<8x16xf32> -> vector<8x16xf32>
    %c0_23 = arith.constant 0 : index
    %c0_24 = arith.constant 0 : index
    %c128 = arith.constant 128 : index
    %42 = vector.load %arg7[%c0_23, %c0_24, %c128] : memref<1x1x3712xf32, #tpu.memory_space<vmem>>, vector<1x1x16xf32>
    %43 = vector.shape_cast %42 : vector<1x1x16xf32> to vector<1x16xf32>
    %44 = vector.broadcast %43 : vector<1x16xf32> to vector<8x16xf32>
    %45 = arith.addf %41, %44 : vector<8x16xf32>
    %c0_25 = arith.constant 0 : index
    %c2 = arith.constant 2 : index
    %c0_26 = arith.constant 0 : index
    %c0_27 = arith.constant 0 : index
    %46 = vector.load %arg2[%c0_25, %c2, %c0_26, %c0_27] : memref<1x6x32x16xbf16, #tpu.memory_space<vmem>>, vector<1x1x32x16xbf16>
    %47 = vector.shape_cast %46 : vector<1x1x32x16xbf16> to vector<32x16xbf16>
    %cst_28 = arith.constant dense<0.000000e+00> : vector<8x16xf32>
    %48 = tpu.matmul %30, %47, %cst_28 {dimension_numbers = #tpu.dot_dimension_numbers<[1], [0], [0], [1], [0, 0, 1, 1], [], []>} : vector<8x32xbf16>, vector<32x16xbf16>, vector<8x16xf32> -> vector<8x16xf32>
    %c0_29 = arith.constant 0 : index
    %c0_30 = arith.constant 0 : index
    %c256 = arith.constant 256 : index
    %49 = vector.load %arg7[%c0_29, %c0_30, %c256] : memref<1x1x3712xf32, #tpu.memory_space<vmem>>, vector<1x1x16xf32>
    %50 = vector.shape_cast %49 : vector<1x1x16xf32> to vector<1x16xf32>
    %51 = vector.broadcast %50 : vector<1x16xf32> to vector<8x16xf32>
    %52 = arith.addf %48, %51 : vector<8x16xf32>
    %53 = arith.truncf %38 : vector<8x16xf32> to vector<8x16xbf16>
    %54 = arith.truncf %45 : vector<8x16xf32> to vector<8x16xbf16>
    %cst_31 = arith.constant dense<0.000000e+00> : vector<8x8xf32>
    %55 = tpu.matmul %53, %54, %cst_31 {dimension_numbers = #tpu.dot_dimension_numbers<[1], [1], [0], [0], [0, 0, 1, 0], [], []>} : vector<8x16xbf16>, vector<8x16xbf16>, vector<8x8xf32> -> vector<8x8xf32>
    %cst_32 = arith.constant 2.500000e-01 : f32
    %56 = vector.broadcast %cst_32 : f32 to vector<8x8xf32>
    %57 = arith.mulf %55, %56 : vector<8x8xf32>
    %cst_33 = arith.constant dense<0xFF800000> : vector<8xf32>
    %58 = vector.multi_reduction <maximumf>, %57, %cst_33 [1] : vector<8x8xf32> to vector<8xf32>
    %59 = vector.shape_cast %58 : vector<8xf32> to vector<8x1xf32>
    %60 = vector.broadcast %59 : vector<8x1xf32> to vector<8x8xf32>
    %61 = arith.subf %57, %60 : vector<8x8xf32>
    %62 = math.exp %61 : vector<8x8xf32>
    %cst_34 = arith.constant dense<0.000000e+00> : vector<8xf32>
    %63 = vector.multi_reduction <add>, %62, %cst_34 [1] : vector<8x8xf32> to vector<8xf32>
    %64 = vector.shape_cast %63 : vector<8xf32> to vector<8x1xf32>
    %65 = vector.broadcast %64 : vector<8x1xf32> to vector<8x8xf32>
    %66 = arith.divf %62, %65 : vector<8x8xf32>
    %67 = arith.truncf %66 : vector<8x8xf32> to vector<8x8xbf16>
    %68 = arith.truncf %52 : vector<8x16xf32> to vector<8x16xbf16>
    %cst_35 = arith.constant dense<0.000000e+00> : vector<8x16xf32>
    %69 = tpu.matmul %67, %68, %cst_35 {dimension_numbers = #tpu.dot_dimension_numbers<[1], [0], [0], [1], [0, 0, 1, 1], [], []>} : vector<8x8xbf16>, vector<8x16xbf16>, vector<8x16xf32> -> vector<8x16xf32>
    %70 = arith.truncf %69 : vector<8x16xf32> to vector<8x16xbf16>
    %c0_36 = arith.constant 0 : index
    %c0_37 = arith.constant 0 : index
    %c0_38 = arith.constant 0 : index
    %c0_39 = arith.constant 0 : index
    %71 = vector.load %arg3[%c0_36, %c0_37, %c0_38, %c0_39] : memref<1x2x16x32xbf16, #tpu.memory_space<vmem>>, vector<1x1x16x32xbf16>
    %72 = vector.shape_cast %71 : vector<1x1x16x32xbf16> to vector<16x32xbf16>
    %cst_40 = arith.constant dense<0.000000e+00> : vector<8x32xf32>
    %73 = tpu.matmul %70, %72, %cst_40 {dimension_numbers = #tpu.dot_dimension_numbers<[1], [0], [0], [1], [0, 0, 1, 1], [], []>} : vector<8x16xbf16>, vector<16x32xbf16>, vector<8x32xf32> -> vector<8x32xf32>
    %74 = arith.addf %31, %73 : vector<8x32xf32>
    %c0_41 = arith.constant 0 : index
    %c3 = arith.constant 3 : index
    %c0_42 = arith.constant 0 : index
    %c0_43 = arith.constant 0 : index
    %75 = vector.load %arg2[%c0_41, %c3, %c0_42, %c0_43] : memref<1x6x32x16xbf16, #tpu.memory_space<vmem>>, vector<1x1x32x16xbf16>
    %76 = vector.shape_cast %75 : vector<1x1x32x16xbf16> to vector<32x16xbf16>
    %cst_44 = arith.constant dense<0.000000e+00> : vector<8x16xf32>
    %77 = tpu.matmul %30, %76, %cst_44 {dimension_numbers = #tpu.dot_dimension_numbers<[1], [0], [0], [1], [0, 0, 1, 1], [], []>} : vector<8x32xbf16>, vector<32x16xbf16>, vector<8x16xf32> -> vector<8x16xf32>
    %c0_45 = arith.constant 0 : index
    %c0_46 = arith.constant 0 : index
    %c384 = arith.constant 384 : index
    %78 = vector.load %arg7[%c0_45, %c0_46, %c384] : memref<1x1x3712xf32, #tpu.memory_space<vmem>>, vector<1x1x16xf32>
    %79 = vector.shape_cast %78 : vector<1x1x16xf32> to vector<1x16xf32>
    %80 = vector.broadcast %79 : vector<1x16xf32> to vector<8x16xf32>
    %81 = arith.addf %77, %80 : vector<8x16xf32>
    %c0_47 = arith.constant 0 : index
    %c4 = arith.constant 4 : index
    %c0_48 = arith.constant 0 : index
    %c0_49 = arith.constant 0 : index
    %82 = vector.load %arg2[%c0_47, %c4, %c0_48, %c0_49] : memref<1x6x32x16xbf16, #tpu.memory_space<vmem>>, vector<1x1x32x16xbf16>
    %83 = vector.shape_cast %82 : vector<1x1x32x16xbf16> to vector<32x16xbf16>
    %cst_50 = arith.constant dense<0.000000e+00> : vector<8x16xf32>
    %84 = tpu.matmul %30, %83, %cst_50 {dimension_numbers = #tpu.dot_dimension_numbers<[1], [0], [0], [1], [0, 0, 1, 1], [], []>} : vector<8x32xbf16>, vector<32x16xbf16>, vector<8x16xf32> -> vector<8x16xf32>
    %c0_51 = arith.constant 0 : index
    %c0_52 = arith.constant 0 : index
    %c512 = arith.constant 512 : index
    %85 = vector.load %arg7[%c0_51, %c0_52, %c512] : memref<1x1x3712xf32, #tpu.memory_space<vmem>>, vector<1x1x16xf32>
    %86 = vector.shape_cast %85 : vector<1x1x16xf32> to vector<1x16xf32>
    %87 = vector.broadcast %86 : vector<1x16xf32> to vector<8x16xf32>
    %88 = arith.addf %84, %87 : vector<8x16xf32>
    %c0_53 = arith.constant 0 : index
    %c5 = arith.constant 5 : index
    %c0_54 = arith.constant 0 : index
    %c0_55 = arith.constant 0 : index
    %89 = vector.load %arg2[%c0_53, %c5, %c0_54, %c0_55] : memref<1x6x32x16xbf16, #tpu.memory_space<vmem>>, vector<1x1x32x16xbf16>
    %90 = vector.shape_cast %89 : vector<1x1x32x16xbf16> to vector<32x16xbf16>
    %cst_56 = arith.constant dense<0.000000e+00> : vector<8x16xf32>
    %91 = tpu.matmul %30, %90, %cst_56 {dimension_numbers = #tpu.dot_dimension_numbers<[1], [0], [0], [1], [0, 0, 1, 1], [], []>} : vector<8x32xbf16>, vector<32x16xbf16>, vector<8x16xf32> -> vector<8x16xf32>
    %c0_57 = arith.constant 0 : index
    %c0_58 = arith.constant 0 : index
    %c640 = arith.constant 640 : index
    %92 = vector.load %arg7[%c0_57, %c0_58, %c640] : memref<1x1x3712xf32, #tpu.memory_space<vmem>>, vector<1x1x16xf32>
    %93 = vector.shape_cast %92 : vector<1x1x16xf32> to vector<1x16xf32>
    %94 = vector.broadcast %93 : vector<1x16xf32> to vector<8x16xf32>
    %95 = arith.addf %91, %94 : vector<8x16xf32>
    %96 = arith.truncf %81 : vector<8x16xf32> to vector<8x16xbf16>
    %97 = arith.truncf %88 : vector<8x16xf32> to vector<8x16xbf16>
    %cst_59 = arith.constant dense<0.000000e+00> : vector<8x8xf32>
    %98 = tpu.matmul %96, %97, %cst_59 {dimension_numbers = #tpu.dot_dimension_numbers<[1], [1], [0], [0], [0, 0, 1, 0], [], []>} : vector<8x16xbf16>, vector<8x16xbf16>, vector<8x8xf32> -> vector<8x8xf32>
    %cst_60 = arith.constant 2.500000e-01 : f32
    %99 = vector.broadcast %cst_60 : f32 to vector<8x8xf32>
    %100 = arith.mulf %98, %99 : vector<8x8xf32>
    %cst_61 = arith.constant dense<0xFF800000> : vector<8xf32>
    %101 = vector.multi_reduction <maximumf>, %100, %cst_61 [1] : vector<8x8xf32> to vector<8xf32>
    %102 = vector.shape_cast %101 : vector<8xf32> to vector<8x1xf32>
    %103 = vector.broadcast %102 : vector<8x1xf32> to vector<8x8xf32>
    %104 = arith.subf %100, %103 : vector<8x8xf32>
    %105 = math.exp %104 : vector<8x8xf32>
    %cst_62 = arith.constant dense<0.000000e+00> : vector<8xf32>
    %106 = vector.multi_reduction <add>, %105, %cst_62 [1] : vector<8x8xf32> to vector<8xf32>
    %107 = vector.shape_cast %106 : vector<8xf32> to vector<8x1xf32>
    %108 = vector.broadcast %107 : vector<8x1xf32> to vector<8x8xf32>
    %109 = arith.divf %105, %108 : vector<8x8xf32>
    %110 = arith.truncf %109 : vector<8x8xf32> to vector<8x8xbf16>
    %111 = arith.truncf %95 : vector<8x16xf32> to vector<8x16xbf16>
    %cst_63 = arith.constant dense<0.000000e+00> : vector<8x16xf32>
    %112 = tpu.matmul %110, %111, %cst_63 {dimension_numbers = #tpu.dot_dimension_numbers<[1], [0], [0], [1], [0, 0, 1, 1], [], []>} : vector<8x8xbf16>, vector<8x16xbf16>, vector<8x16xf32> -> vector<8x16xf32>
    %113 = arith.truncf %112 : vector<8x16xf32> to vector<8x16xbf16>
    %c0_64 = arith.constant 0 : index
    %c1_65 = arith.constant 1 : index
    %c0_66 = arith.constant 0 : index
    %c0_67 = arith.constant 0 : index
    %114 = vector.load %arg3[%c0_64, %c1_65, %c0_66, %c0_67] : memref<1x2x16x32xbf16, #tpu.memory_space<vmem>>, vector<1x1x16x32xbf16>
    %115 = vector.shape_cast %114 : vector<1x1x16x32xbf16> to vector<16x32xbf16>
    %cst_68 = arith.constant dense<0.000000e+00> : vector<8x32xf32>
    %116 = tpu.matmul %113, %115, %cst_68 {dimension_numbers = #tpu.dot_dimension_numbers<[1], [0], [0], [1], [0, 0, 1, 1], [], []>} : vector<8x16xbf16>, vector<16x32xbf16>, vector<8x32xf32> -> vector<8x32xf32>
    %117 = arith.addf %74, %116 : vector<8x32xf32>
    %c0_69 = arith.constant 0 : index
    %c0_70 = arith.constant 0 : index
    %c768 = arith.constant 768 : index
    %118 = vector.load %arg7[%c0_69, %c0_70, %c768] : memref<1x1x3712xf32, #tpu.memory_space<vmem>>, vector<1x1x32xf32>
    %119 = vector.shape_cast %118 : vector<1x1x32xf32> to vector<1x32xf32>
    %120 = vector.broadcast %119 : vector<1x32xf32> to vector<8x32xf32>
    %121 = arith.addf %117, %120 : vector<8x32xf32>
    %122 = arith.addf %29, %121 : vector<8x32xf32>
    %cst_71 = arith.constant dense<0.000000e+00> : vector<8xf32>
    %123 = vector.multi_reduction <add>, %122, %cst_71 [1] : vector<8x32xf32> to vector<8xf32>
    %124 = vector.shape_cast %123 : vector<8xf32> to vector<8x1xf32>
    %cst_72 = arith.constant 3.200000e+01 : f32
    %125 = vector.broadcast %cst_72 : f32 to vector<8x1xf32>
    %126 = arith.divf %124, %125 : vector<8x1xf32>
    %127 = vector.broadcast %126 : vector<8x1xf32> to vector<8x32xf32>
    %128 = arith.subf %122, %127 : vector<8x32xf32>
    %129 = arith.mulf %128, %128 : vector<8x32xf32>
    %cst_73 = arith.constant dense<0.000000e+00> : vector<8xf32>
    %130 = vector.multi_reduction <add>, %129, %cst_73 [1] : vector<8x32xf32> to vector<8xf32>
    %131 = vector.shape_cast %130 : vector<8xf32> to vector<8x1xf32>
    %cst_74 = arith.constant 3.200000e+01 : f32
    %132 = vector.broadcast %cst_74 : f32 to vector<8x1xf32>
    %133 = arith.divf %131, %132 : vector<8x1xf32>
    %134 = vector.broadcast %126 : vector<8x1xf32> to vector<8x32xf32>
    %135 = arith.subf %122, %134 : vector<8x32xf32>
    %cst_75 = arith.constant 9.99999974E-6 : f32
    %136 = vector.broadcast %cst_75 : f32 to vector<8x1xf32>
    %137 = arith.addf %133, %136 : vector<8x1xf32>
    %138 = math.rsqrt %137 : vector<8x1xf32>
    %139 = vector.broadcast %138 : vector<8x1xf32> to vector<8x32xf32>
    %140 = arith.mulf %135, %139 : vector<8x32xf32>
    %c0_76 = arith.constant 0 : index
    %c0_77 = arith.constant 0 : index
    %c896 = arith.constant 896 : index
    %141 = vector.load %arg7[%c0_76, %c0_77, %c896] : memref<1x1x3712xf32, #tpu.memory_space<vmem>>, vector<1x1x32xf32>
    %142 = vector.shape_cast %141 : vector<1x1x32xf32> to vector<1x32xf32>
    %143 = vector.broadcast %142 : vector<1x32xf32> to vector<8x32xf32>
    %144 = arith.mulf %140, %143 : vector<8x32xf32>
    %c0_78 = arith.constant 0 : index
    %c0_79 = arith.constant 0 : index
    %c1024 = arith.constant 1024 : index
    %145 = vector.load %arg7[%c0_78, %c0_79, %c1024] : memref<1x1x3712xf32, #tpu.memory_space<vmem>>, vector<1x1x32xf32>
    %146 = vector.shape_cast %145 : vector<1x1x32xf32> to vector<1x32xf32>
    %147 = vector.broadcast %146 : vector<1x32xf32> to vector<8x32xf32>
    %148 = arith.addf %144, %147 : vector<8x32xf32>
    %149 = arith.truncf %148 : vector<8x32xf32> to vector<8x32xbf16>
    %c0_80 = arith.constant 0 : index
    %c0_81 = arith.constant 0 : index
    %c0_82 = arith.constant 0 : index
    %150 = vector.load %arg4[%c0_80, %c0_81, %c0_82] : memref<1x32x2048xbf16, #tpu.memory_space<vmem>>, vector<1x32x2048xbf16>
    %151 = vector.shape_cast %150 : vector<1x32x2048xbf16> to vector<32x2048xbf16>
    %cst_83 = arith.constant dense<0.000000e+00> : vector<8x2048xf32>
    %152 = tpu.matmul %149, %151, %cst_83 {dimension_numbers = #tpu.dot_dimension_numbers<[1], [0], [0], [1], [0, 0, 1, 1], [], []>} : vector<8x32xbf16>, vector<32x2048xbf16>, vector<8x2048xf32> -> vector<8x2048xf32>
    %c0_84 = arith.constant 0 : index
    %c0_85 = arith.constant 0 : index
    %c1152 = arith.constant 1152 : index
    %153 = vector.load %arg7[%c0_84, %c0_85, %c1152] : memref<1x1x3712xf32, #tpu.memory_space<vmem>>, vector<1x1x2048xf32>
    %154 = vector.shape_cast %153 : vector<1x1x2048xf32> to vector<1x2048xf32>
    %155 = vector.broadcast %154 : vector<1x2048xf32> to vector<8x2048xf32>
    %156 = arith.addf %152, %155 : vector<8x2048xf32>
    %cst_86 = arith.constant 0.000000e+00 : f32
    %157 = vector.broadcast %cst_86 : f32 to vector<8x2048xf32>
    %158 = arith.maximumf %156, %157 : vector<8x2048xf32>
    %159 = arith.truncf %158 : vector<8x2048xf32> to vector<8x2048xbf16>
    %c0_87 = arith.constant 0 : index
    %c0_88 = arith.constant 0 : index
    %c0_89 = arith.constant 0 : index
    %160 = vector.load %arg5[%c0_87, %c0_88, %c0_89] : memref<1x2048x32xbf16, #tpu.memory_space<vmem>>, vector<1x2048x32xbf16>
    %161 = vector.shape_cast %160 : vector<1x2048x32xbf16> to vector<2048x32xbf16>
    %cst_90 = arith.constant dense<0.000000e+00> : vector<8x32xf32>
    %162 = tpu.matmul %159, %161, %cst_90 {dimension_numbers = #tpu.dot_dimension_numbers<[1], [0], [0], [1], [0, 0, 1, 1], [], []>} : vector<8x2048xbf16>, vector<2048x32xbf16>, vector<8x32xf32> -> vector<8x32xf32>
    %c0_91 = arith.constant 0 : index
    %c0_92 = arith.constant 0 : index
    %c3200 = arith.constant 3200 : index
    %163 = vector.load %arg7[%c0_91, %c0_92, %c3200] : memref<1x1x3712xf32, #tpu.memory_space<vmem>>, vector<1x1x32xf32>
    %164 = vector.shape_cast %163 : vector<1x1x32xf32> to vector<1x32xf32>
    %165 = vector.broadcast %164 : vector<1x32xf32> to vector<8x32xf32>
    %166 = arith.addf %162, %165 : vector<8x32xf32>
    %167 = arith.addf %148, %166 : vector<8x32xf32>
    %cst_93 = arith.constant dense<0.000000e+00> : vector<8xf32>
    %168 = vector.multi_reduction <add>, %167, %cst_93 [1] : vector<8x32xf32> to vector<8xf32>
    %169 = vector.shape_cast %168 : vector<8xf32> to vector<8x1xf32>
    %cst_94 = arith.constant 3.200000e+01 : f32
    %170 = vector.broadcast %cst_94 : f32 to vector<8x1xf32>
    %171 = arith.divf %169, %170 : vector<8x1xf32>
    %172 = vector.broadcast %171 : vector<8x1xf32> to vector<8x32xf32>
    %173 = arith.subf %167, %172 : vector<8x32xf32>
    %174 = arith.mulf %173, %173 : vector<8x32xf32>
    %cst_95 = arith.constant dense<0.000000e+00> : vector<8xf32>
    %175 = vector.multi_reduction <add>, %174, %cst_95 [1] : vector<8x32xf32> to vector<8xf32>
    %176 = vector.shape_cast %175 : vector<8xf32> to vector<8x1xf32>
    %cst_96 = arith.constant 3.200000e+01 : f32
    %177 = vector.broadcast %cst_96 : f32 to vector<8x1xf32>
    %178 = arith.divf %176, %177 : vector<8x1xf32>
    %179 = vector.broadcast %171 : vector<8x1xf32> to vector<8x32xf32>
    %180 = arith.subf %167, %179 : vector<8x32xf32>
    %cst_97 = arith.constant 9.99999974E-6 : f32
    %181 = vector.broadcast %cst_97 : f32 to vector<8x1xf32>
    %182 = arith.addf %178, %181 : vector<8x1xf32>
    %183 = math.rsqrt %182 : vector<8x1xf32>
    %184 = vector.broadcast %183 : vector<8x1xf32> to vector<8x32xf32>
    %185 = arith.mulf %180, %184 : vector<8x32xf32>
    %186 = arith.truncf %185 : vector<8x32xf32> to vector<8x32xbf16>
    %c0_98 = arith.constant 0 : index
    %c0_99 = arith.constant 0 : index
    %c0_100 = arith.constant 0 : index
    %187 = vector.load %arg6[%c0_98, %c0_99, %c0_100] : memref<1x32x32xbf16, #tpu.memory_space<vmem>>, vector<1x32x32xbf16>
    %188 = vector.shape_cast %187 : vector<1x32x32xbf16> to vector<32x32xbf16>
    %cst_101 = arith.constant dense<0.000000e+00> : vector<8x32xf32>
    %189 = tpu.matmul %186, %188, %cst_101 {dimension_numbers = #tpu.dot_dimension_numbers<[1], [0], [0], [1], [0, 0, 1, 1], [], []>} : vector<8x32xbf16>, vector<32x32xbf16>, vector<8x32xf32> -> vector<8x32xf32>
    %c0_102 = arith.constant 0 : index
    %c0_103 = arith.constant 0 : index
    %c3328 = arith.constant 3328 : index
    %190 = vector.load %arg7[%c0_102, %c0_103, %c3328] : memref<1x1x3712xf32, #tpu.memory_space<vmem>>, vector<1x1x32xf32>
    %191 = vector.shape_cast %190 : vector<1x1x32xf32> to vector<1x32xf32>
    %192 = vector.broadcast %191 : vector<1x32xf32> to vector<8x32xf32>
    %193 = arith.addf %189, %192 : vector<8x32xf32>
    %cst_104 = arith.constant dense<0xFF800000> : vector<8xf32>
    %194 = vector.multi_reduction <maximumf>, %193, %cst_104 [1] : vector<8x32xf32> to vector<8xf32>
    %195 = vector.shape_cast %194 : vector<8xf32> to vector<8x1xf32>
    %196 = vector.broadcast %195 : vector<8x1xf32> to vector<8x32xf32>
    %197 = arith.subf %193, %196 : vector<8x32xf32>
    %198 = math.exp %197 : vector<8x32xf32>
    %cst_105 = arith.constant dense<0.000000e+00> : vector<8xf32>
    %199 = vector.multi_reduction <add>, %198, %cst_105 [1] : vector<8x32xf32> to vector<8xf32>
    %200 = vector.shape_cast %199 : vector<8xf32> to vector<8x1xf32>
    %201 = vector.broadcast %200 : vector<8x1xf32> to vector<8x32xf32>
    %202 = arith.divf %198, %201 : vector<8x32xf32>
    %c0_106 = arith.constant 0 : index
    %c0_107 = arith.constant 0 : index
    %203 = vector.load %arg9[%c0_106, %c0_107] : memref<8x32xf32, #tpu.memory_space<vmem>>, vector<8x32xf32>
    tpu.vector_store %arg9[%c0_106, %c0_107], %202 {strides = array<i32>} : memref<8x32xf32, #tpu.memory_space<vmem>>, vector<8x32xf32>,
    %c0_108 = arith.constant 0 : index
    %c0_109 = arith.constant 0 : index
    %c0_110 = arith.constant 0 : index
    %204 = vector.load %arg8[%c0_108, %c0_109, %c0_110] : memref<1x8x32xf32, #tpu.memory_space<vmem>>, vector<1x8x32xf32>
    %205 = vector.shape_cast %204 : vector<1x8x32xf32> to vector<8x32xf32>
    %206 = vector.shape_cast %202 : vector<8x32xf32> to vector<1x8x32xf32>
    tpu.vector_store %arg8[%c0_108, %c0_109, %c0_110], %206 {strides = array<i32>} : memref<1x8x32xf32, #tpu.memory_space<vmem>>, vector<1x8x32xf32>,
    return
  }
  func.func @transform_0(%arg0: i32) -> (i32, i32) {
    %c0_i32 = arith.constant 0 : i32
    %c0_i32_0 = arith.constant 0 : i32
    %c0_i32_1 = arith.constant 0 : i32
    return %c0_i32, %c0_i32_0 : i32, i32
  }
  func.func @transform_1(%arg0: i32) -> (i32, i32, i32, i32) {
    %c0_i32 = arith.constant 0 : i32
    %c0_i32_0 = arith.constant 0 : i32
    %c0_i32_1 = arith.constant 0 : i32
    %c0_i32_2 = arith.constant 0 : i32
    return %arg0, %c0_i32, %c0_i32_0, %c0_i32_1 : i32, i32, i32, i32
  }
  func.func @transform_2(%arg0: i32) -> (i32, i32, i32, i32) {
    %c0_i32 = arith.constant 0 : i32
    %c0_i32_0 = arith.constant 0 : i32
    %c0_i32_1 = arith.constant 0 : i32
    %c0_i32_2 = arith.constant 0 : i32
    return %arg0, %c0_i32, %c0_i32_0, %c0_i32_1 : i32, i32, i32, i32
  }
  func.func @transform_3(%arg0: i32) -> (i32, i32, i32) {
    %c0_i32 = arith.constant 0 : i32
    %c0_i32_0 = arith.constant 0 : i32
    %c0_i32_1 = arith.constant 0 : i32
    return %arg0, %c0_i32, %c0_i32_0 : i32, i32, i32
  }
  func.func @transform_4(%arg0: i32) -> (i32, i32, i32) {
    %c0_i32 = arith.constant 0 : i32
    %c0_i32_0 = arith.constant 0 : i32
    %c0_i32_1 = arith.constant 0 : i32
    return %arg0, %c0_i32, %c0_i32_0 : i32, i32, i32
  }
  func.func @transform_5(%arg0: i32) -> (i32, i32, i32) {
    %c0_i32 = arith.constant 0 : i32
    %c0_i32_0 = arith.constant 0 : i32
    %c0_i32_1 = arith.constant 0 : i32
    return %arg0, %c0_i32, %c0_i32_0 : i32, i32, i32
  }
  func.func @transform_6(%arg0: i32) -> (i32, i32, i32) {
    %c0_i32 = arith.constant 0 : i32
    %c0_i32_0 = arith.constant 0 : i32
    %c0_i32_1 = arith.constant 0 : i32
    return %arg0, %c0_i32, %c0_i32_0 : i32, i32, i32
  }
  func.func @transform_7(%arg0: i32) -> (i32, i32, i32) {
    %c0_i32 = arith.constant 0 : i32
    %c0_i32_0 = arith.constant 0 : i32
    %c0_i32_1 = arith.constant 0 : i32
    return %arg0, %c0_i32, %c0_i32_0 : i32, i32, i32
  }
}

</mosaic_0001>

<bundles_post_ra>
// kernel: tpu_custom_call.1
= control target key start
LH: loop header
LB: loop body
LE: loop exit
PB: predicated region body
PF: predicated region fallthrough
CT: control target
= control target key end

     0   :  { %s4377_s0 = inlined_call_operand.vmem [shape: f32[8,32], index: 0, kind: input, shape index: {}]   ;;  %s4378_s1 = inlined_call_operand.vmem [shape: bf16[2,6,32,16], index: 1, kind: input, shape index: {}]   ;;  %s4379_s2 = inlined_call_operand.vmem [shape: bf16[2,2,16,32], index: 2, kind: input, shape index: {}]   ;;  %s4380_s3 = inlined_call_operand.vmem [shape: bf16[2,32,2048], index: 3, kind: input, shape index: {}]   ;;  %s4381_s4 = inlined_call_operand.vmem [shape: bf16[2,2048,32], index: 4, kind: input, shape index: {}]   ;;  %s4382_s5 = inlined_call_operand.vmem [shape: bf16[2,32,32], index: 5, kind: input, shape index: {}]   ;;  %s4383_s6 = inlined_call_operand.vmem [shape: f32[2,1,3712], index: 6, kind: input, shape index: {}]   ;;  %s4384_s7 = inlined_call_operand.hbm [shape: f32[2,8,32], index: 7, kind: output, shape index: {}]  }
   0x1   :  { %4391 = sst [smem:[#allocation11_spill]] %s4379_s2 }
   0x2   :  { %12 = vsyncpa [#allocation4], 0 }
   0x3   :  { %14 = vsyncpa [#allocation4 + $0x1], 0  ;;  %s3919_s24 = smov 0   ;;  %s3921_s25 = smov 0  }
   0x4   :  { %s3923_s26 = smov 0   ;;  %s3925_s27 = smov 0  }
   0x5 LB: > { %4392 = sst [smem:[#allocation6_spill]] %s3864_s24  ;;  %s3940_s28 = sadd.s32 4294967295, %s3876_s27   ;;  %s3876_s27 = sphi %s3925_s27, %s4403_s27   ;;  %s3872_s26 = sphi %s3923_s26, %s4405_s26   ;;  %s3868_s25 = sphi %s3921_s25, %s4407_s25   ;;  %s3864_s24 = sphi %s3919_s24, %s4406_s24  }
   0x6   : > { %4393 = sst [smem:[#allocation7_spill]] %s3872_s26  ;;  %s2785_s29 = sadd.s32 4294967294, %s3876_s27  }
   0x7   : > { %s3944_s30 = sadd.s32 1, %s3876_s27   ;;  %s204_s8 = sadd.s32 1, %s3872_s26 }
   0x8   : > { %4394 = sst [smem:[#allocation8_spill]] %s3944_s30  ;;  %s201_s9 = ssub.s32 %s3876_s27, %s3944_s30 }
   0x9   : > { %p214_p0 = scmp.ne.s32.totalorder %s3872_s26, %s3868_s25  ;;  %p202_p1 = scmp.eq.s32.totalorder %s201_s9, 0 }
   0xa   : > { %p215_p2 = scmp.eq.s32.totalorder %s3940_s28, 1  ;;  %p220_p3 = scmp.ne.s32.totalorder %s3868_s25, %s3864_s24 }
   0xb   : > { %p221_p4 = scmp.eq.s32.totalorder %s2785_s29, 1  ;;  %p2788_p7 = scmp.ge.s32.totalorder %s3876_s27, 1 }
   0xc   : > { %s3955_s10 = scalar_select %p202_p1, %s3872_s26, %s204_s8  }
   0xd   : > { %p3957_p5 = por %p215_p2, %p214_p0  ;;  %p3961_p6 = por %p221_p4, %p220_p3 }
   0xe   : > { %4395 = sst [smem:[#allocation9_spill]] %s3955_s10  ;;  %p289_p8 = scmp.lt.s32.totalorder %s3876_s27, 3 }
   0xf   : > { %s4397_s12 = scalar_select %p3961_p6, 1, 0 }
  0x10   : > { %p290_p9 = pnand %p2788_p7, %p289_p8 }
  0x11   : > { %4398 = sst [smem:[#allocation10_spill]] %s4397_s12  ;;  %s4385_s13 = sand.u32 (!%p290_p9), 1, %s3868_s25  }
  0x12   : > { %293 = sbr.rel (%p290_p9) target bundleno = 2801 (0xaf1), region = 48  ;;  %p345_p10 = scmp.lt.s32.totalorder (!%p290_p9), %s3940_s28, 1 }
  0x13   : > { %s3971_s14 = sshll.u32 (!%p290_p9), %s4385_s13, 3  ;;  %s4399_s2 = sld [smem:[#allocation11_spill]] (!%p290_p9) }
  0x14   : > { %s344_s8 = scalar_lea.vmem (!%p290_p9), [#allocation3], %s3971_s14  ;;  %p2799_p11 = scmp.ne.s32.totalorder (!%p290_p9), %s3940_s28, 0 }
  0x17   : > { %s346_s15 = scalar_select %p345_p10, %s3940_s28, 1 }
  0x19   : > { %s3739_s16 = smul.u32 96, %s346_s15  ;;  %s3559_s17 = sshll.u32 %s346_s15, 4 }
  0x1a   : > { %s3977_s20 = scalar_lea.vmem %s4399_s2, %s3559_s17  ;;  %s3560_s21 = sshll.u32 %s346_s15, 8 }
  0x1b   : > { %s3982_s29 = scalar_lea.vmem %s4378_s1, %s3739_s16  ;;  %s3987_s13 = scalar_lea.vmem %s4380_s3, %s3560_s21 }
  0x1c   : > { %s3561_s10 = sshll.u32 %s346_s15, 10  ;;  %s3992_s12 = scalar_lea.vmem %s4382_s5, %s3559_s17 }
  0x1d   : > { %s3997_s2 = scalar_lea.vmem %s4381_s4, %s3561_s10  ;;  %s3740_s24 = smul.u32 29, %s346_s15 }
  0x1e   : > { %378 = sbr.rel (%p2799_p11) target bundleno = 37 (0x25), region = 52 }
  0x1f   : > { %s4002_s23 = scalar_lea.vmem %s4383_s6, %s3740_s24 }
  0x23   : > { %v379_v0 = vld [vmem:[%s4377_s0] sm:$0xff]  ;;  %vm380_vm0 = vcmask 261120  }
  0x24   : > { %381 = vst.msk [vmem:[#allocation2] sm:$0xff] %vm380_vm0, %v379_v0 }
  0x25 PF: > { %vm383_vm1 = vcmask 261120   ;;  %v3878_v3 = vmov 32.0   ;;  %v3564_v15 = vld [vmem:[%s3982_s29 + $0x8] sm:$0xff]  ;;  %v3566_v16 = vld [vmem:[%s3982_s29 + $0x18] sm:$0xff]  ;;  %v3563_v18 = vld [vmem:[%s3982_s29] sm:$0xff]  ;;  %vm530_vm6 = vcmask 130048  }
  0x26   : > { %3794 = vrcp.f32 %v3878_v3  ;;  %v3568_v17 = vld [vmem:[%s3982_s29 + $0x28] sm:$0xff]  ;;  %453 = vmatpush.bf16.msra.mxu0 %v3564_v15  ;;  %487 = vmatpush.bf16.msra.mxu1 %v3566_v16  ;;  %v3565_v19 = vld [vmem:[%s3982_s29 + $0x10] sm:$0xff]  ;;  %v3567_v20 = vld [vmem:[%s3982_s29 + $0x20] sm:$0xff]  ;;  %vm581_vm7 = vcmask 1043456   ;;  %vm551_vm8 = vcmask 64512   ;;  %s2663_s10 = sshll.u32 %s344_s8, 4  ;;  %s2664_s10 = int_to_ptr.vmem [resolvable:$true] %s2663_s10 }
  0x27   : > { %521 = vmatpush.bf16.msra.mxu2 %v3568_v17  ;;  %v3571_v22 = vld [vmem:[%s3982_s29 + $0x38] sm:$0xff]  ;;  %v3573_v23 = vld [vmem:[%s3982_s29 + $0x48] sm:$0xff]  ;;  %v3570_v25 = vld [vmem:[%s3982_s29 + $0x30] sm:$0xff]  ;;  %s3834_s18 = scalar_lea.hbm %s4384_s7, 16 }
  0x28   : > { %v3572_v26 = vld [vmem:[%s3982_s29 + $0x40] sm:$0xff]  ;;  %v3781_v34 = vld [vmem:[%s4002_s23 + $0x1b] ss:$0 sm:$0xff]  ;;  %v3782_v36 = vld [vmem:[%s4002_s23 + $0x1c] ss:$0 sm:$0xff] }
  0x29   : > { %v3784_v41 = vld [vmem:[%s4002_s23 + $0x1] ss:$0 sm:$0xff]  ;;  %v3783_v45 = vld [vmem:[%s4002_s23] ss:$0 sm:$0xff]  ;;  %v3575_v47 = vld [vmem:[%s3982_s29 + $0x58] sm:$0xff] }
  0x2a   : > { %454 = vmatpush.bf16.msra.mxu0 %v3563_v18  ;;  %488 = vmatpush.bf16.msra.mxu1 %v3565_v19  ;;  %v3785_v48 = vld [vmem:[%s4002_s23 + $0x2] ss:$0 sm:$0xff]  ;;  %v3574_v52 = vld [vmem:[%s3982_s29 + $0x50] sm:$0xff]  ;;  %v3787_v61 = vld [vmem:[%s4002_s23 + $0x4] ss:$0 sm:$0xff] }
  0x2b   : > { %v382_v1 = vld [vmem:[#allocation2] sm:$0xff]  ;;  %522 = vmatpush.bf16.msra.mxu2 %v3567_v20 }
  0x2c   : > { %v384_v2 = vsel %vm383_vm1, %v382_v1, 0.0  ;;  %v3795_v4 = vpop.eup %3794 }
  0x2d   : > { %385 = vadd.xlane.f32.xlu0 %v384_v2  ;;  %v388_v5 = vmul.f32 32.0, %v3795_v4  ;;  %vm392_vm2 = vweird.f32 %v3795_v4 }
  0x2e   : > { %628 = vmatpush.bf16.msrb.mxu1 %v3571_v22 }
  0x2f   : > { %v389_v6 = vsub.f32 1.0, %v388_v5  ;;  %662 = vmatpush.bf16.msrb.mxu2 %v3573_v23 }
  0x31   : > { %v390_v7 = vmul.f32 %v3795_v4, %v389_v6 }
  0x32   : > { %629 = vmatpush.bf16.msrb.mxu1 %v3570_v25 }
  0x33   : > { %v391_v8 = vadd.f32 %v3795_v4, %v390_v7  ;;  %663 = vmatpush.bf16.msrb.mxu2 %v3572_v26 }
  0x35   : > { %v4010_v9 = vsel %vm392_vm2, %v3795_v4, %v391_v8  ;;  %v3788_v8 = vld [vmem:[%s4002_s23 + $0x5] ss:$0 sm:$0xff] }
  0xa0   : > { %v386_v10 = vpop.xlane.xlu0 %385 }
  0xa1   : > { %v394_v11 = vmul.f32 %v4010_v9, %v386_v10 }
  0xa3   : > { %v395_v12 = vsub.f32 %v382_v1, %v394_v11 }
  0xa5   : > { %v396_v13 = vmul.f32 %v395_v12, %v395_v12 }
  0xa7   : > { %v397_v14 = vsel %vm383_vm1, %v396_v13, 0.0 }
  0xa8   : > { %398 = vadd.xlane.f32.xlu0 %v397_v14 }
 0x11b   : > { %v399_v21 = vpop.xlane.xlu0 %398 }
 0x11c   : > { %v400_v24 = vmul.f32 %v399_v21, %v4010_v9 }
 0x11e   : > { %v401_v27 = vadd.f32 1e-05, %v400_v24 }
 0x120   : > { %3796 = vrsqrt.f32 %v401_v27  ;;  %vm408_vm4 = vweird.f32 %v401_v27 }
 0x126   : > { %v3797_v28 = vpop.eup %3796 }
 0x127   : > { %v403_v29 = vmul.f32 %v3797_v28, %v401_v27  ;;  %vm409_vm3 = vweird.f32 %v3797_v28 }
 0x128   : > { %vm410_vm5 = vmor %vm408_vm4, %vm409_vm3 }
 0x129   : > { %v404_v30 = vmul.f32 %v3797_v28, %v403_v29 }
 0x12b   : > { %v405_v31 = vmul.f32 0.5, %v404_v30 }
 0x12d   : > { %v406_v32 = vsub.f32 1.5, %v405_v31 }
 0x12f   : > { %v407_v33 = vmul.f32 %v3797_v28, %v406_v32 }
 0x131   : > { %v411_v35 = vsel %vm410_vm5, %v3797_v28, %v407_v33  ;;  %v3786_v33 = vld [vmem:[%s4002_s23 + $0x3] ss:$0 sm:$0xff] }
 0x132   : > { %v412_v37 = vmul.f32 %v411_v35, %v395_v12 }
 0x134   : > { %v417_v38 = vmul.f32 %v3781_v34, %v412_v37 }
 0x136   : > { %v4027_v39 = vadd.f32 %v3782_v36, %v417_v38  ;;  %v3569_v36 = vld [vmem:[%s3977_s20] sm:$0xff] }
 0x138   : > { %v423_v40 = vpack.c.bf16 %v4027_v39, %v4027_v39 }
 0x13a   : > { %2808 = vmatmul.msk.bf16.vlgmr.msra.gmra.mxu0 %vm383_vm1, %v423_v40  ;;  %2821 = vmatmul.msk.bf16.vlgmr.msra.gmra.mxu1 %vm383_vm1, %v423_v40 }
 0x13b   : > { %2834 = vmatmul.msk.bf16.vlgmr.msra.gmra.mxu2 %vm383_vm1, %v423_v40 }
 0x14a   : > { %2849 = vmatmul.msk.bf16.vlgmr.msrb.gmra.mxu1 %vm383_vm1, %v423_v40 }
 0x14b   : > { %2862 = vmatmul.msk.bf16.vlgmr.msrb.gmra.mxu2 %vm383_vm1, %v423_v40 }
 0x1b7   : > { %v456_v42 = vpop.f32.mrf.mxu0  ;;  %v490_v43 = vpop.f32.mrf.mxu1 }
 0x1b8   : > { %v491_v44 = vadd.f32 %v3784_v41, %v490_v43  ;;  %v457_v50 = vadd.f32 %v3783_v45, %v456_v42 }
 0x1ba   : > { %v529_v46 = vpack.c.bf16 %v491_v44, %v491_v44  ;;  %v528_v57 = vpack.c.bf16 %v457_v50, %v457_v50 }
 0x1bc   : > { %v535_v49 = vsel %vm530_vm6, %v529_v46, 0 }
 0x1bd   : > { %544 = vmatpush.bf16.xpose.msra.mxu3 %v535_v49 }
 0x1be   : > { %v524_v51 = vpop.f32.mrf.mxu2 }
 0x1bf   : > { %v525_v53 = vadd.f32 %v3785_v48, %v524_v51  ;;  %v458_v54 = vpop.f32.mrf.mxu0  ;;  %v492_v55 = vpop.f32.mrf.mxu1 }
 0x1c1   : > { %v577_v56 = vpack.c.bf16 %v525_v53, %v525_v53 }
 0x1c3   : > { %v583_v58 = vsel %vm581_vm7, %v577_v56, 0 }
 0x1c4   : > { %592 = vmatpush.bf16.msrb.mxu0 %v583_v58  ;;  %2835 = vmatmul.msk.bf16.vlgmr.msra.gmra.mxu3 %vm530_vm6, %v528_v57 }
 0x1c5   : > { %696 = vmatpush.bf16.msrb.mxu3 %v3575_v47 }
 0x1c6   : > { %v526_v59 = vpop.f32.mrf.mxu2 }
 0x1c7   : > { %v631_v60 = vpop.f32.mrf.mxu1 }
 0x1c8   : > { %v632_v34 = vadd.f32 %v3786_v33, %v631_v60  ;;  %v2894_v33 = vld [vmem:[%s3987_s13 + $0x40] sm:$0xf0] }
 0x1c9   : > { %697 = vmatpush.bf16.msrb.mxu3 %v3574_v52  ;;  %v3576_v52 = vld [vmem:[%s3977_s20 + $0x8] sm:$0xff] }
 0x1ca   : > { %v703_v35 = vpack.c.bf16 %v632_v34, %v632_v34  ;;  %790 = vmatpush.bf16.msra.mxu2 %v3576_v52  ;;  %v2900_v34 = vld [vmem:[%s3987_s13 + $0x8] sm:$0xf] }
 0x1cd   : > { %812 = vmatpush.bf16.msra.mxu3 %v3569_v36 }
 0x1ce   : > { %v665_v62 = vpop.f32.mrf.mxu2 }
 0x1cf   : > { %v666_v63 = vadd.f32 %v3787_v61, %v665_v62  ;;  %v633_v0 = vpop.f32.mrf.mxu1 }
 0x1d1   : > { %v704_v1 = vpack.c.bf16 %v666_v63, %v666_v63 }
 0x1d3   : > { %v709_v2 = vsel %vm530_vm6, %v704_v1, 0 }
 0x1d4   : > { %718 = vmatpush.bf16.xpose.msra.mxu0 %v709_v2  ;;  %2875 = vmatmul.msk.bf16.vlgmr.msrb.gmra.mxu3 %vm383_vm1, %v423_v40 }
 0x1d6   : > { %v667_v3 = vpop.f32.mrf.mxu2 }
 0x247   : > { %v546_v4 = vpop.f32.mrf.mxu3 }
 0x248   : > { %v550_v5 = vmul.f32 0.25, %v546_v4 }
 0x24a   : > { %v552_v6 = vsel %vm551_vm8, %v550_v5, -inf }
 0x24b   : > { %553 = vmax.xlane.f32.xlu1 %v552_v6 }
 0x24f   : > { %v548_v7 = vpop.f32.mrf.mxu3 }
 0x257   : > { %v699_v10 = vpop.f32.mrf.mxu3 }
 0x258   : > { %v700_v11 = vadd.f32 %v3788_v8, %v699_v10 }
 0x25a   : > { %v750_v12 = vpack.c.bf16 %v700_v11, %v700_v11 }
 0x25c   : > { %v755_v13 = vsel %vm581_vm7, %v750_v12, 0 }
 0x25d   : > { %764 = vmatpush.bf16.msra.mxu1 %v755_v13 }
 0x25f   : > { %v701_v14 = vpop.f32.mrf.mxu3 }
 0x2be   : > { %v554_v15 = vpop.xlane.xlu1 %553 }
 0x2bf   : > { %v555_v16 = vsub.f32 %v550_v5, %v554_v15  ;;  %v3789_v5 = vld [vmem:[%s4002_s23 + $0x6] ss:$0 sm:$0xff] }
 0x2c1   : > { %v556_v17 = vmul.f32 1.442695, %v555_v16 }
 0x2c3   : > { %3798 = vpow2.f32 %v556_v17 }
 0x2c9   : > { %v3799_v18 = vpop.eup %3798 }
 0x2ca   : > { %v558_v19 = vsel %vm551_vm8, %v3799_v18, 0.0 }
 0x2cb   : > { %559 = vadd.xlane.f32.xlu1 %v558_v19  ;;  %v3593_v19 = vld [vmem:[%s3987_s13 + $0x84] sm:$0xf] }
 0x33e   : > { %v560_v20 = vpop.xlane.xlu1 %559 }
 0x33f   : > { %3800 = vrcp.f32 %v560_v20  ;;  %v572_v24 = vand.u32 2147483648, %v560_v20  ;;  %v570_v26 = vand.u32 2147483647, %v560_v20  ;;  %vm566_vm10 = vweird.f32 %v560_v20 }
 0x341   : > { %v573_v28 = vor.u32 1.1754944e-38, %v572_v24  ;;  %vm571_vm12 = vcmp.eq.f32.partialorder %v570_v26, 8.507059e+37  ;;  %v3594_v26 = vld [vmem:[%s3987_s13 + $0x8c] sm:$0xf] }
 0x345   : > { %v3801_v21 = vpop.eup %3800 }
 0x346   : > { %v562_v22 = vmul.f32 %v3801_v21, %v560_v20  ;;  %vm567_vm9 = vweird.f32 %v3801_v21 }
 0x347   : > { %vm568_vm11 = vmor %vm566_vm10, %vm567_vm9 }
 0x348   : > { %v563_v23 = vsub.f32 1.0, %v562_v22  ;;  %v2964_v22 = vld [vmem:[%s3987_s13 + $0x88] sm:$0xf] }
 0x34a   : > { %v564_v25 = vmul.f32 %v3801_v21, %v563_v23  ;;  %v3602_v23 = vld [vmem:[%s3987_s13 + $0xc4] sm:$0xf0] }
 0x34c   : > { %v565_v27 = vadd.f32 %v3801_v21, %v564_v25  ;;  %v2965_v25 = vor.u32 %v3602_v23, %v2964_v22  ;;  %v3606_v23 = vld [vmem:[%s3987_s13 + $0xe4] sm:$0xf0] }
 0x34e   : > { %v569_v29 = vsel %vm568_vm11, %v3801_v21, %v565_v27  ;;  %v2958_v21 = vld [vmem:[%s3987_s13 + $0xc0] sm:$0xf0]  ;;  %v2966_v27 = vld [vmem:[%s3987_s13 + $0xc8] sm:$0xf0]  ;;  %1120 = vmatpush.bf16.msrb.mxu2 %v2965_v25 }
 0x34f   : > { %v574_v30 = vsel %vm571_vm12, %v573_v28, %v569_v29  ;;  %v2961_v24 = vor.u32 %v3593_v19, %v2958_v21  ;;  %v2969_v28 = vor.u32 %v3594_v26, %v2966_v27  ;;  %v2892_v29 = vld [vmem:[%s3987_s13] sm:$0xf]  ;;  %v3597_v19 = vld [vmem:[%s3987_s13 + $0xa4] sm:$0xf]  ;;  %v2996_v21 = vld [vmem:[%s3987_s13 + $0xa8] sm:$0xf] }
 0x350   : > { %v575_v31 = vmul.f32 %v3799_v18, %v574_v30  ;;  %v3601_v18 = vld [vmem:[%s3987_s13 + $0xbc] sm:$0xf0]  ;;  %v2998_v25 = vld [vmem:[%s3987_s13 + $0xe8] sm:$0xf0] }
 0x351   : > { %1107 = vmatpush.bf16.msrb.mxu1 %v2961_v24  ;;  %v3585_v30 = vld [vmem:[%s3987_s13 + $0x3c] sm:$0xf0]  ;;  %1133 = vmatpush.bf16.msrb.mxu3 %v2969_v28  ;;  %v3598_v24 = vld [vmem:[%s3987_s13 + $0xac] sm:$0xf] }
 0x352   : > { %v576_v32 = vpack.c.bf16 %v575_v31, %v575_v31  ;;  %v3577_v31 = vld [vmem:[%s3987_s13 + $0x4] sm:$0xf]  ;;  %v2924_v28 = vld [vmem:[%s3987_s13 + $0x20] sm:$0xf] }
 0x353   : > { %v2897_v36 = vor.u32 %v3577_v31, %v2894_v33  ;;  %v3001_v31 = vor.u32 %v3598_v24, %v2998_v25  ;;  %v2926_v33 = vld [vmem:[%s3987_s13 + $0x60] sm:$0xf0]  ;;  %v3636_v24 = vld [vmem:[%s3997_s2 + $0xd8] sm:$0xff]  ;;  %v3611_v25 = vld [vmem:[%s3997_s2 + $0x10] sm:$0xff] }
 0x354   : > { %2836 = vmatmul.msk.bf16.vlgmr.msrb.gmra.mxu0 %vm551_vm8, %v576_v32  ;;  %v2893_v32 = vor.u32 %v3585_v30, %v2892_v29  ;;  %v3589_v29 = vld [vmem:[%s3987_s13 + $0x5c] sm:$0xf0]  ;;  %v2997_v30 = vor.u32 %v3606_v23, %v2996_v21  ;;  %v3620_v21 = vld [vmem:[%s3997_s2 + $0x58] sm:$0xff] }
 0x355   : > { %1108 = vmatpush.bf16.msrb.mxu1 %v2897_v36  ;;  %v3582_v36 = vld [vmem:[%s3987_s13 + $0x2c] sm:$0xf]  ;;  %v3628_v23 = vld [vmem:[%s3997_s2 + $0x98] sm:$0xff] }
 0x364   : > { %2876 = vmatmul.msk.bf16.vlgmr.msra.gmra.mxu0 %vm530_vm6, %v703_v35  ;;  %v3586_v35 = vld [vmem:[%s3987_s13 + $0x44] sm:$0xf0] }
 0x3d1   : > { %v594_v37 = vpop.f32.mrf.mxu0 }
 0x3d2   : > { %v598_v38 = vpack.c.bf16 %v594_v37, %v594_v37  ;;  %v2901_v37 = vor.u32 %v3586_v35, %v2900_v34  ;;  %v2932_v34 = vld [vmem:[%s3987_s13 + $0x28] sm:$0xf] }
 0x3d3   : > { %v3590_v35 = vld [vmem:[%s3987_s13 + $0x64] sm:$0xf0] }
 0x3d4   : > { %2889 = vmatmul.msk.bf16.vlgmr.msra.gmra.mxu3 %vm530_vm6, %v598_v38  ;;  %v3578_v38 = vld [vmem:[%s3987_s13 + $0xc] sm:$0xf]  ;;  %1121 = vmatpush.bf16.msrb.mxu2 %v2901_v37 }
 0x3d5   : > { %v2934_v37 = vld [vmem:[%s3987_s13 + $0x68] sm:$0xf0] }
 0x3d9   : > { %v596_v40 = vpop.f32.mrf.mxu0 }
 0x3da   : > { %v2902_v40 = vld [vmem:[%s3987_s13 + $0x48] sm:$0xf0] }
 0x3e1   : > { %v720_v41 = vpop.f32.mrf.mxu0 }
 0x3e2   : > { %v724_v42 = vmul.f32 0.25, %v720_v41  ;;  %v2905_v41 = vor.u32 %v3578_v38, %v2902_v40  ;;  %v2925_v38 = vor.u32 %v3589_v29, %v2924_v28  ;;  %v3635_v28 = vld [vmem:[%s3997_s2 + $0xd0] sm:$0xff]  ;;  %v3610_v29 = vld [vmem:[%s3997_s2 + $0x8] sm:$0xff] }
 0x3e4   : > { %v725_v43 = vsel %vm551_vm8, %v724_v42, -inf  ;;  %1134 = vmatpush.bf16.msrb.mxu3 %v2905_v41  ;;  %v2933_v41 = vor.u32 %v3590_v35, %v2932_v34  ;;  %v3648_v34 = vld [vmem:[%s3997_s2 + $0x138] sm:$0xff] }
 0x3e5   : > { %726 = vmax.xlane.f32.xlu2 %v725_v43  ;;  %v2972_v43 = vld [vmem:[%s3987_s13 + $0x90] sm:$0xf]  ;;  %v3656_v35 = vld [vmem:[%s3997_s2 + $0x178] sm:$0xff] }
 0x3e9   : > { %v722_v44 = vpop.f32.mrf.mxu0 }
 0x3ea   : > { %v3603_v44 = vld [vmem:[%s3987_s13 + $0xcc] sm:$0xf0] }
 0x457   : > { %v814_v45 = vpop.f32.mrf.mxu3 }
 0x458   : > { %v727_v46 = vpop.xlane.xlu2 %726 }
 0x459   : > { %v728_v47 = vsub.f32 %v724_v42, %v727_v46 }
 0x45b   : > { %v729_v48 = vmul.f32 1.442695, %v728_v47  ;;  %v2973_v47 = vor.u32 %v3603_v44, %v2972_v43  ;;  %v3004_v43 = vld [vmem:[%s3987_s13 + $0xb0] sm:$0xf] }
 0x45c   : > { %v3607_v44 = vld [vmem:[%s3987_s13 + $0xec] sm:$0xf0] }
 0x45d   : > { %3802 = vpow2.f32 %v729_v48  ;;  %v2974_v48 = vld [vmem:[%s3987_s13 + $0xd0] sm:$0xf0] }
 0x45f   : > { %v816_v49 = vpop.f32.mrf.mxu3 }
 0x460   : > { %v2980_v49 = vld [vmem:[%s3987_s13 + $0x98] sm:$0xf] }
 0x463   : > { %v3803_v50 = vpop.eup %3802 }
 0x464   : > { %v731_v51 = vsel %vm551_vm8, %v3803_v50, 0.0 }
 0x465   : > { %732 = vadd.xlane.f32.xlu2 %v731_v51 }
 0x4d8   : > { %v733_v53 = vpop.xlane.xlu2 %732 }
 0x4d9   : > { %3804 = vrcp.f32 %v733_v53  ;;  %v745_v57 = vand.u32 2147483648, %v733_v53  ;;  %v743_v59 = vand.u32 2147483647, %v733_v53  ;;  %vm739_vm14 = vweird.f32 %v733_v53 }
 0x4db   : > { %v746_v61 = vor.u32 1.1754944e-38, %v745_v57  ;;  %vm744_vm0 = vcmp.eq.f32.partialorder %v743_v59, 8.507059e+37  ;;  %v3579_v59 = vld [vmem:[%s3987_s13 + $0x14] sm:$0xf] }
 0x4df   : > { %v3805_v54 = vpop.eup %3804 }
 0x4e0   : > { %v735_v55 = vmul.f32 %v3805_v54, %v733_v53  ;;  %vm740_vm13 = vweird.f32 %v3805_v54  ;;  %v3596_v53 = vld [vmem:[%s3987_s13 + $0x9c] sm:$0xf] }
 0x4e1   : > { %vm741_vm15 = vmor %vm739_vm14, %vm740_vm13 }
 0x4e2   : > { %v736_v56 = vsub.f32 1.0, %v735_v55  ;;  %v2908_v55 = vld [vmem:[%s3987_s13 + $0x10] sm:$0xf] }
 0x4e4   : > { %v737_v58 = vmul.f32 %v3805_v54, %v736_v56 }
 0x4e6   : > { %v738_v60 = vadd.f32 %v3805_v54, %v737_v58  ;;  %v3587_v58 = vld [vmem:[%s3987_s13 + $0x4c] sm:$0xf0] }
 0x4e8   : > { %v742_v62 = vsel %vm741_vm15, %v3805_v54, %v738_v60  ;;  %v2982_v54 = vld [vmem:[%s3987_s13 + $0xd8] sm:$0xf0]  ;;  %v2909_v60 = vor.u32 %v3587_v58, %v2908_v55  ;;  %v2942_v58 = vld [vmem:[%s3987_s13 + $0x70] sm:$0xf0] }
 0x4e9   : > { %v747_v63 = vsel %vm744_vm0, %v746_v61, %v742_v62  ;;  %v2985_v57 = vor.u32 %v3596_v53, %v2982_v54  ;;  %v2910_v61 = vld [vmem:[%s3987_s13 + $0x50] sm:$0xf0]  ;;  %v2916_v62 = vld [vmem:[%s3987_s13 + $0x18] sm:$0xf]  ;;  %v2940_v53 = vld [vmem:[%s3987_s13 + $0x30] sm:$0xf] }
 0x4ea   : > { %v748_v0 = vmul.f32 %v3803_v50, %v747_v63  ;;  %v3604_v50 = vld [vmem:[%s3987_s13 + $0xd4] sm:$0xf0]  ;;  %v3591_v54 = vld [vmem:[%s3987_s13 + $0x6c] sm:$0xf0] }
 0x4eb   : > { %v2981_v52 = vor.u32 %v3604_v50, %v2980_v49  ;;  %v3588_v63 = vld [vmem:[%s3987_s13 + $0x54] sm:$0xf0]  ;;  %1185 = vmatpush.bf16.msra.mxu3 %v2985_v57  ;;  %v3600_v49 = vld [vmem:[%s3987_s13 + $0xbc] sm:$0xf]  ;;  %v3583_v57 = vld [vmem:[%s3987_s13 + $0x34] sm:$0xf] }
 0x4ec   : > { %v749_v1 = vpack.c.bf16 %v748_v0, %v748_v0  ;;  %v2913_v0 = vor.u32 %v3579_v59, %v2910_v61  ;;  %v3014_v50 = vld [vmem:[%s3987_s13 + $0xf8] sm:$0xf0]  ;;  %v2948_v59 = vld [vmem:[%s3987_s13 + $0x38] sm:$0xf] }
 0x4ed   : > { %v3584_v61 = vld [vmem:[%s3987_s13 + $0x3c] sm:$0xf] }
 0x4ee   : > { %2877 = vmatmul.msk.bf16.vlgmr.msra.gmra.mxu1 %vm551_vm8, %v749_v1  ;;  %v2917_v1 = vor.u32 %v3588_v63, %v2916_v62  ;;  %v2950_v62 = vld [vmem:[%s3987_s13 + $0x78] sm:$0xf0]  ;;  %v2941_v63 = vor.u32 %v3591_v54, %v2940_v53 }
 0x4ef   : > { %v3644_v53 = vld [vmem:[%s3997_s2 + $0x118] sm:$0xff] }
 0x4f0   : > { %v3652_v54 = vld [vmem:[%s3997_s2 + $0x158] sm:$0xff] }
 0x56b   : > { %v766_v2 = vpop.f32.mrf.mxu1 }
 0x56c   : > { %v770_v3 = vpack.c.bf16 %v766_v2, %v766_v2  ;;  %v3580_v2 = vld [vmem:[%s3987_s13 + $0x1c] sm:$0xf] }
 0x56e   : > { %2884 = vmatmul.msk.bf16.vlgmr.msra.gmra.mxu2 %vm530_vm6, %v770_v3  ;;  %v2918_v3 = vld [vmem:[%s3987_s13 + $0x58] sm:$0xf0] }
 0x56f   : > { %1172 = vmatpush.bf16.msra.mxu2 %v2981_v52 }
 0x573   : > { %v768_v4 = vpop.f32.mrf.mxu1  ;;  %1173 = vmatpush.bf16.msra.mxu2 %v2917_v1 }
 0x574   : > { %v2921_v4 = vor.u32 %v3580_v2, %v2918_v3  ;;  %v2953_v2 = vor.u32 %v3584_v61, %v2950_v62  ;;  %v3616_v3 = vld [vmem:[%s3997_s2 + $0x38] sm:$0xff]  ;;  %v3659_v61 = vld [vmem:[%s3997_s2 + $0x190] sm:$0xff] }
 0x575   : > { %v3667_v62 = vld [vmem:[%s3997_s2 + $0x1d0] sm:$0xff] }
 0x576   : > { %1186 = vmatpush.bf16.msra.mxu3 %v2921_v4  ;;  %v3624_v4 = vld [vmem:[%s3997_s2 + $0x78] sm:$0xff] }
 0x5f1   : > { %v792_v6 = vpop.f32.mrf.mxu2 }
 0x5f2   : > { %v815_v7 = vadd.f32 %v814_v45, %v792_v6  ;;  %v3595_v45 = vld [vmem:[%s3987_s13 + $0x94] sm:$0xf] }
 0x5f3   : > { %v2977_v51 = vor.u32 %v3595_v45, %v2974_v48  ;;  %v3599_v45 = vld [vmem:[%s3987_s13 + $0xb4] sm:$0xf]  ;;  %v3608_v48 = vld [vmem:[%s3987_s13 + $0xf4] sm:$0xf0] }
 0x5f4   : > { %v822_v8 = vadd.f32 %v3789_v5, %v815_v7 }
 0x5f5   : > { %1159 = vmatpush.bf16.msra.mxu1 %v2977_v51  ;;  %v3005_v51 = vor.u32 %v3607_v44, %v3004_v43  ;;  %v3663_v43 = vld [vmem:[%s3997_s2 + $0x1b0] sm:$0xff] }
 0x5f6   : > { %v823_v10 = vadd.f32 %v822_v8, %v4027_v39  ;;  %v2956_v39 = vld [vmem:[%s3987_s13 + $0x80] sm:$0xf]  ;;  %v3671_v44 = vld [vmem:[%s3997_s2 + $0x1f0] sm:$0xff] }
 0x5f7   : > { %v2957_v20 = vor.u32 %v3601_v18, %v2956_v39  ;;  %v2988_v39 = vld [vmem:[%s3987_s13 + $0xa0] sm:$0xf] }
 0x5f8   : > { %v824_v11 = vsel %vm383_vm1, %v823_v10, 0.0  ;;  %v3605_v18 = vld [vmem:[%s3987_s13 + $0xdc] sm:$0xf0] }
 0x5f9   : > { %825 = vadd.xlane.f32.xlu0 %v824_v11  ;;  %v794_v12 = vpop.f32.mrf.mxu2  ;;  %1094 = vmatpush.bf16.msrb.mxu0 %v2957_v20  ;;  %v2990_v20 = vld [vmem:[%s3987_s13 + $0xe0] sm:$0xf0]  ;;  %v2989_v26 = vor.u32 %v3605_v18, %v2988_v39 }
 0x5fa   : > { %1160 = vmatpush.bf16.msra.mxu1 %v2913_v0  ;;  %v3790_v12 = vld [vmem:[%s4002_s23 + $0x7] ss:$0 sm:$0xff]  ;;  %v2993_v27 = vor.u32 %v3597_v19, %v2990_v20  ;;  %v2945_v0 = vor.u32 %v3583_v57, %v2942_v58  ;;  %v3612_v20 = vld [vmem:[%s3997_s2 + $0x18] sm:$0xff] }
 0x5fb   : > { %v3621_v39 = vld [vmem:[%s3997_s2 + $0x60] sm:$0xff]  ;;  %v3660_v57 = vld [vmem:[%s3997_s2 + $0x198] sm:$0xff] }
 0x5fc   : > { %v3629_v18 = vld [vmem:[%s3997_s2 + $0xa0] sm:$0xff]  ;;  %v3668_v58 = vld [vmem:[%s3997_s2 + $0x1d8] sm:$0xff] }
 0x5fd   : > { %1095 = vmatpush.bf16.msrb.mxu0 %v2893_v32  ;;  %v3581_v32 = vld [vmem:[%s3987_s13 + $0x24] sm:$0xf] }
 0x5fe   : > { %v2929_v40 = vor.u32 %v3581_v32, %v2926_v33  ;;  %v3637_v19 = vld [vmem:[%s3997_s2 + $0xe0] sm:$0xff] }
 0x5ff   : > { %v3609_v32 = vld [vmem:[%s3997_s2] sm:$0xff] }
 0x600   : > { %v3617_v33 = vld [vmem:[%s3997_s2 + $0x40] sm:$0xff] }
 0x601   : > { %1146 = vmatpush.bf16.msra.mxu0 %v2973_v47  ;;  %v3012_v47 = vld [vmem:[%s3987_s13 + $0xb8] sm:$0xf] }
 0x602   : > { %v3013_v55 = vor.u32 %v3608_v48, %v3012_v47  ;;  %v3662_v47 = vld [vmem:[%s3997_s2 + $0x1a8] sm:$0xff] }
 0x603   : > { %v3670_v48 = vld [vmem:[%s3997_s2 + $0x1e8] sm:$0xff] }
 0x605   : > { %1147 = vmatpush.bf16.msra.mxu0 %v2909_v60  ;;  %v3592_v60 = vld [vmem:[%s3987_s13 + $0x74] sm:$0xf0] }
 0x606   : > { %v2949_v1 = vor.u32 %v3592_v60, %v2948_v59  ;;  %v3642_v59 = vld [vmem:[%s3997_s2 + $0x108] sm:$0xff] }
 0x607   : > { %v3650_v60 = vld [vmem:[%s3997_s2 + $0x148] sm:$0xff] }
 0x66c   : > { %v826_v13 = vpop.xlane.xlu0 %825 }
 0x66d   : > { %v827_v14 = vmul.f32 %v826_v13, %v4010_v9 }
 0x66f   : > { %v4065_v15 = vsub.f32 %v823_v10, %v827_v14  ;;  %v3791_v14 = vld [vmem:[%s4002_s23 + $0x8] ss:$0 sm:$0xff] }
 0x671   : > { %v829_v16 = vmul.f32 %v4065_v15, %v4065_v15 }
 0x673   : > { %v830_v17 = vsel %vm383_vm1, %v829_v16, 0.0 }
 0x674   : > { %831 = vadd.xlane.f32.xlu1 %v830_v17 }
 0x6e7   : > { %v832_v42 = vpop.xlane.xlu1 %831 }
 0x6e8   : > { %v833_v46 = vmul.f32 %v832_v42, %v4010_v9  ;;  %v2937_v42 = vor.u32 %v3582_v36, %v2934_v37  ;;  %v3625_v36 = vld [vmem:[%s3997_s2 + $0x80] sm:$0xff] }
 0x6e9   : > { %v3633_v37 = vld [vmem:[%s3997_s2 + $0xc0] sm:$0xff] }
 0x6ea   : > { %v834_v56 = vadd.f32 1e-05, %v833_v46  ;;  %v3006_v46 = vld [vmem:[%s3987_s13 + $0xf0] sm:$0xf0] }
 0x6eb   : > { %v3009_v52 = vor.u32 %v3599_v45, %v3006_v46  ;;  %v3646_v45 = vld [vmem:[%s3997_s2 + $0x128] sm:$0xff] }
 0x6ec   : > { %3806 = vrsqrt.f32 %v834_v56  ;;  %vm841_vm3 = vweird.f32 %v834_v56  ;;  %v3654_v46 = vld [vmem:[%s3997_s2 + $0x168] sm:$0xff] }
 0x6f2   : > { %v3807_v5 = vpop.eup %3806 }
 0x6f3   : > { %v836_v6 = vmul.f32 %v3807_v5, %v834_v56  ;;  %vm842_vm2 = vweird.f32 %v3807_v5  ;;  %v3017_v56 = vor.u32 %v3600_v49, %v3014_v50  ;;  %v3645_v49 = vld [vmem:[%s3997_s2 + $0x120] sm:$0xff] }
 0x6f4   : > { %vm843_vm4 = vmor %vm841_vm3, %vm842_vm2  ;;  %v3653_v50 = vld [vmem:[%s3997_s2 + $0x160] sm:$0xff] }
 0x6f5   : > { %v837_v7 = vmul.f32 %v3807_v5, %v836_v6  ;;  %v3640_v6 = vld [vmem:[%s3997_s2 + $0xf8] sm:$0xff] }
 0x6f7   : > { %v838_v8 = vmul.f32 0.5, %v837_v7  ;;  %v3615_v7 = vld [vmem:[%s3997_s2 + $0x30] sm:$0xff] }
 0x6f9   : > { %v839_v10 = vsub.f32 1.5, %v838_v8  ;;  %v3623_v8 = vld [vmem:[%s3997_s2 + $0x70] sm:$0xff] }
 0x6fb   : > { %v840_v11 = vmul.f32 %v3807_v5, %v839_v10  ;;  %v3631_v10 = vld [vmem:[%s3997_s2 + $0xb0] sm:$0xff] }
 0x6fd   : > { %v844_v13 = vsel %vm843_vm4, %v3807_v5, %v840_v11  ;;  %v3632_v5 = vld [vmem:[%s3997_s2 + $0xb8] sm:$0xff]  ;;  %v3639_v11 = vld [vmem:[%s3997_s2 + $0xf0] sm:$0xff] }
 0x6fe   : > { %v845_v16 = vmul.f32 %v844_v13, %v4065_v15  ;;  %v3622_v13 = vld [vmem:[%s3997_s2 + $0x68] sm:$0xff] }
 0x700   : > { %v850_v17 = vmul.f32 %v3790_v12, %v845_v16  ;;  %v3614_v12 = vld [vmem:[%s3997_s2 + $0x28] sm:$0xff] }
 0x701   : > { %v3638_v16 = vld [vmem:[%s3997_s2 + $0xe8] sm:$0xff] }
 0x702   : > { %v4111_v22 = vadd.f32 %v3791_v14, %v850_v17  ;;  %v3630_v14 = vld [vmem:[%s3997_s2 + $0xa8] sm:$0xff]  ;;  %v3613_v17 = vld [vmem:[%s3997_s2 + $0x20] sm:$0xff] }
 0x704   : > { %v4118_v15 = vpack.c.bf16 %v4111_v22, %v4111_v22 }
 0x706   : > { %3018 = vmatmul.msk.bf16.vlgmr.msrb.gmra.mxu0 %vm383_vm1, %v4118_v15  ;;  %3019 = vmatmul.msk.bf16.vlgmr.msrb.gmra.mxu1 %vm383_vm1, %v4118_v15 }
 0x707   : > { %3020 = vmatmul.msk.bf16.vlgmr.msrb.gmra.mxu2 %vm383_vm1, %v4118_v15  ;;  %3021 = vmatmul.msk.bf16.vlgmr.msrb.gmra.mxu3 %vm383_vm1, %v4118_v15 }
 0x708   : > { %1198 = vmatpush.bf16.msrb.mxu0 %v2989_v26  ;;  %1211 = vmatpush.bf16.msrb.mxu1 %v2993_v27  ;;  %v3619_v26 = vld [vmem:[%s3997_s2 + $0x50] sm:$0xff] }
 0x709   : > { %1224 = vmatpush.bf16.msrb.mxu2 %v2997_v30  ;;  %1237 = vmatpush.bf16.msrb.mxu3 %v3001_v31  ;;  %v3627_v27 = vld [vmem:[%s3997_s2 + $0x90] sm:$0xff]  ;;  %v3626_v30 = vld [vmem:[%s3997_s2 + $0x88] sm:$0xff] }
 0x70a   : > { %v3634_v31 = vld [vmem:[%s3997_s2 + $0xc8] sm:$0xff] }
 0x70c   : > { %1199 = vmatpush.bf16.msrb.mxu0 %v2925_v38  ;;  %1212 = vmatpush.bf16.msrb.mxu1 %v2929_v40  ;;  %v3664_v38 = vld [vmem:[%s3997_s2 + $0x1b8] sm:$0xff] }
 0x70d   : > { %1225 = vmatpush.bf16.msrb.mxu2 %v2933_v41  ;;  %1238 = vmatpush.bf16.msrb.mxu3 %v2937_v42  ;;  %v3672_v40 = vld [vmem:[%s3997_s2 + $0x1f8] sm:$0xff]  ;;  %v3647_v41 = vld [vmem:[%s3997_s2 + $0x130] sm:$0xff] }
 0x70e   : > { %v3655_v42 = vld [vmem:[%s3997_s2 + $0x170] sm:$0xff] }
 0x716   : > { %3022 = vmatmul.msk.bf16.vlgmr.msra.gmra.mxu0 %vm383_vm1, %v4118_v15  ;;  %3023 = vmatmul.msk.bf16.vlgmr.msra.gmra.mxu1 %vm383_vm1, %v4118_v15 }
 0x717   : > { %3024 = vmatmul.msk.bf16.vlgmr.msra.gmra.mxu2 %vm383_vm1, %v4118_v15  ;;  %3025 = vmatmul.msk.bf16.vlgmr.msra.gmra.mxu3 %vm383_vm1, %v4118_v15 }
 0x718   : > { %1250 = vmatpush.bf16.msra.mxu0 %v3005_v51  ;;  %1263 = vmatpush.bf16.msra.mxu1 %v3009_v52  ;;  %v3661_v51 = vld [vmem:[%s3997_s2 + $0x1a0] sm:$0xff] }
 0x719   : > { %1276 = vmatpush.bf16.msra.mxu2 %v3013_v55  ;;  %1289 = vmatpush.bf16.msra.mxu3 %v3017_v56  ;;  %v3669_v52 = vld [vmem:[%s3997_s2 + $0x1e0] sm:$0xff]  ;;  %v3643_v55 = vld [vmem:[%s3997_s2 + $0x110] sm:$0xff] }
 0x71a   : > { %v3651_v56 = vld [vmem:[%s3997_s2 + $0x150] sm:$0xff] }
 0x71c   : > { %1251 = vmatpush.bf16.msra.mxu0 %v2941_v63  ;;  %1264 = vmatpush.bf16.msra.mxu1 %v2945_v0  ;;  %v3641_v63 = vld [vmem:[%s3997_s2 + $0x100] sm:$0xff] }
 0x71d   : > { %1277 = vmatpush.bf16.msra.mxu2 %v2949_v1  ;;  %1290 = vmatpush.bf16.msra.mxu3 %v2953_v2  ;;  %v3649_v0 = vld [vmem:[%s3997_s2 + $0x140] sm:$0xff]  ;;  %v3658_v1 = vld [vmem:[%s3997_s2 + $0x188] sm:$0xff] }
 0x71e   : > { %v3666_v2 = vld [vmem:[%s3997_s2 + $0x1c8] sm:$0xff] }
 0x726   : > { %3026 = vmatmul.msk.bf16.vlgmr.msrb.gmra.mxu0 %vm383_vm1, %v4118_v15  ;;  %3027 = vmatmul.msk.bf16.vlgmr.msrb.gmra.mxu1 %vm383_vm1, %v4118_v15 }
 0x727   : > { %3028 = vmatmul.msk.bf16.vlgmr.msrb.gmra.mxu2 %vm383_vm1, %v4118_v15  ;;  %3029 = vmatmul.msk.bf16.vlgmr.msrb.gmra.mxu3 %vm383_vm1, %v4118_v15 }
 0x728   : > { %2356 = vmatpush.bf16.msrb.mxu0 %v3616_v3  ;;  %2369 = vmatpush.bf16.msrb.mxu1 %v3624_v4  ;;  %v3657_v3 = vld [vmem:[%s3997_s2 + $0x180] sm:$0xff] }
 0x729   : > { %2382 = vmatpush.bf16.msrb.mxu2 %v3632_v5  ;;  %2395 = vmatpush.bf16.msrb.mxu3 %v3640_v6  ;;  %v3665_v4 = vld [vmem:[%s3997_s2 + $0x1c0] sm:$0xff]  ;;  %v4241_v5 = vld [vmem:[%s4002_s23 + $0x9] sm:$0xff] }
 0x72a   : > { %v893_v6 = vperm.slane %v4241_v5, 0 }
 0x72c   : > { %2357 = vmatpush.bf16.msrb.mxu0 %v3615_v7  ;;  %2370 = vmatpush.bf16.msrb.mxu1 %v3623_v8  ;;  %v894_v7 = vperm.slane %v4241_v5, 1 }
 0x72d   : > { %2383 = vmatpush.bf16.msrb.mxu2 %v3631_v10  ;;  %2396 = vmatpush.bf16.msrb.mxu3 %v3639_v11 }
 0x730   : > { %2358 = vmatpush.bf16.msrb.mxu0 %v3614_v12  ;;  %2371 = vmatpush.bf16.msrb.mxu1 %v3622_v13 }
 0x731   : > { %2384 = vmatpush.bf16.msrb.mxu2 %v3630_v14  ;;  %2397 = vmatpush.bf16.msrb.mxu3 %v3638_v16  ;;  %v895_v16 = vperm.slane %v4241_v5, 2 }
 0x734   : > { %2359 = vmatpush.bf16.msrb.mxu0 %v3613_v17  ;;  %2372 = vmatpush.bf16.msrb.mxu1 %v3621_v39  ;;  %v896_v17 = vperm.slane %v4241_v5, 3  ;;  %v3680_v39 = vld [vmem:[%s3997_s2 + $0x238] sm:$0xff] }
 0x735   : > { %2385 = vmatpush.bf16.msrb.mxu2 %v3629_v18  ;;  %2398 = vmatpush.bf16.msrb.mxu3 %v3637_v19  ;;  %v3688_v18 = vld [vmem:[%s3997_s2 + $0x278] sm:$0xff] }
 0x736   : > { %3030 = vmatmul.msk.bf16.vlgmr.msra.gmra.mxu0 %vm383_vm1, %v4118_v15  ;;  %3031 = vmatmul.msk.bf16.vlgmr.msra.gmra.mxu1 %vm383_vm1, %v4118_v15 }
 0x737   : > { %3032 = vmatmul.msk.bf16.vlgmr.msra.gmra.mxu2 %vm383_vm1, %v4118_v15  ;;  %3033 = vmatmul.msk.bf16.vlgmr.msra.gmra.mxu3 %vm383_vm1, %v4118_v15  ;;  %v3618_v15 = vld [vmem:[%s3997_s2 + $0x48] sm:$0xff] }
 0x738   : > { %2360 = vmatpush.bf16.msrb.mxu0 %v3612_v20  ;;  %2373 = vmatpush.bf16.msrb.mxu1 %v3620_v21 }
 0x739   : > { %2386 = vmatpush.bf16.msrb.mxu2 %v3628_v23  ;;  %2399 = vmatpush.bf16.msrb.mxu3 %v3636_v24 }
 0x73c   : > { %2361 = vmatpush.bf16.msrb.mxu0 %v3611_v25  ;;  %2374 = vmatpush.bf16.msrb.mxu1 %v3619_v26 }
 0x73d   : > { %2387 = vmatpush.bf16.msrb.mxu2 %v3627_v27  ;;  %2400 = vmatpush.bf16.msrb.mxu3 %v3635_v28  ;;  %v3679_v28 = vld [vmem:[%s3997_s2 + $0x230] sm:$0xff] }
 0x740   : > { %2362 = vmatpush.bf16.msrb.mxu0 %v3610_v29  ;;  %2375 = vmatpush.bf16.msrb.mxu1 %v3618_v15  ;;  %v3687_v29 = vld [vmem:[%s3997_s2 + $0x270] sm:$0xff] }
 0x741   : > { %2388 = vmatpush.bf16.msrb.mxu2 %v3626_v30  ;;  %2401 = vmatpush.bf16.msrb.mxu3 %v3634_v31  ;;  %v3696_v31 = vld [vmem:[%s3997_s2 + $0x2b8] sm:$0xff] }
 0x744   : > { %2363 = vmatpush.bf16.msrb.mxu0 %v3609_v32  ;;  %2376 = vmatpush.bf16.msrb.mxu1 %v3617_v33  ;;  %v3704_v32 = vld [vmem:[%s3997_s2 + $0x2f8] sm:$0xff] }
 0x745   : > { %2389 = vmatpush.bf16.msrb.mxu2 %v3625_v36  ;;  %2402 = vmatpush.bf16.msrb.mxu3 %v3633_v37  ;;  %v3686_v36 = vld [vmem:[%s3997_s2 + $0x268] sm:$0xff]  ;;  %v897_v37 = vperm.slane %v4241_v5, 4 }
 0x748   : > { %2408 = vmatpush.bf16.msra.mxu0 %v3648_v34  ;;  %2421 = vmatpush.bf16.msra.mxu1 %v3656_v35  ;;  %v3678_v35 = vld [vmem:[%s3997_s2 + $0x228] sm:$0xff] }
 0x749   : > { %2434 = vmatpush.bf16.msra.mxu2 %v3664_v38  ;;  %2447 = vmatpush.bf16.msra.mxu3 %v3672_v40  ;;  %v898_v38 = vperm.slane %v4241_v5, 5 }
 0x74c   : > { %2409 = vmatpush.bf16.msra.mxu0 %v3647_v41  ;;  %2422 = vmatpush.bf16.msra.mxu1 %v3655_v42  ;;  %v3695_v42 = vld [vmem:[%s3997_s2 + $0x2b0] sm:$0xff] }
 0x74d   : > { %2435 = vmatpush.bf16.msra.mxu2 %v3663_v43  ;;  %2448 = vmatpush.bf16.msra.mxu3 %v3671_v44  ;;  %v3703_v43 = vld [vmem:[%s3997_s2 + $0x2f0] sm:$0xff] }
 0x750   : > { %2410 = vmatpush.bf16.msra.mxu0 %v3646_v45  ;;  %2423 = vmatpush.bf16.msra.mxu1 %v3654_v46  ;;  %v3677_v46 = vld [vmem:[%s3997_s2 + $0x220] sm:$0xff] }
 0x751   : > { %2436 = vmatpush.bf16.msra.mxu2 %v3662_v47  ;;  %2449 = vmatpush.bf16.msra.mxu3 %v3670_v48  ;;  %v3685_v47 = vld [vmem:[%s3997_s2 + $0x260] sm:$0xff] }
 0x754   : > { %2411 = vmatpush.bf16.msra.mxu0 %v3645_v49  ;;  %2424 = vmatpush.bf16.msra.mxu1 %v3653_v50 }
 0x755   : > { %2437 = vmatpush.bf16.msra.mxu2 %v3661_v51  ;;  %2450 = vmatpush.bf16.msra.mxu3 %v3669_v52  ;;  %v3694_v52 = vld [vmem:[%s3997_s2 + $0x2a8] sm:$0xff] }
 0x758   : > { %2412 = vmatpush.bf16.msra.mxu0 %v3644_v53  ;;  %2425 = vmatpush.bf16.msra.mxu1 %v3652_v54  ;;  %v3702_v53 = vld [vmem:[%s3997_s2 + $0x2e8] sm:$0xff]  ;;  %v899_v54 = vperm.slane %v4241_v5, 6 }
 0x759   : > { %2438 = vmatpush.bf16.msra.mxu2 %v3660_v57  ;;  %2451 = vmatpush.bf16.msra.mxu3 %v3668_v58  ;;  %v3676_v58 = vld [vmem:[%s3997_s2 + $0x218] sm:$0xff] }
 0x75c   : > { %2413 = vmatpush.bf16.msra.mxu0 %v3643_v55  ;;  %2426 = vmatpush.bf16.msra.mxu1 %v3651_v56  ;;  %v900_v55 = vperm.slane %v4241_v5, 7  ;;  %v3683_v5 = vld [vmem:[%s3997_s2 + $0x250] sm:$0xff] }
 0x75d   : > { %2439 = vmatpush.bf16.msra.mxu2 %v3659_v61  ;;  %2452 = vmatpush.bf16.msra.mxu3 %v3667_v62  ;;  %v3693_v62 = vld [vmem:[%s3997_s2 + $0x2a0] sm:$0xff] }
 0x760   : > { %2414 = vmatpush.bf16.msra.mxu0 %v3642_v59  ;;  %2427 = vmatpush.bf16.msra.mxu1 %v3650_v60  ;;  %v3684_v59 = vld [vmem:[%s3997_s2 + $0x258] sm:$0xff] }
 0x761   : > { %2440 = vmatpush.bf16.msra.mxu2 %v3658_v1  ;;  %2453 = vmatpush.bf16.msra.mxu3 %v3666_v2 }
 0x764   : > { %2415 = vmatpush.bf16.msra.mxu0 %v3641_v63  ;;  %2428 = vmatpush.bf16.msra.mxu1 %v3649_v0  ;;  %v3701_v63 = vld [vmem:[%s3997_s2 + $0x2e0] sm:$0xff] }
 0x765   : > { %2441 = vmatpush.bf16.msra.mxu2 %v3657_v3  ;;  %2454 = vmatpush.bf16.msra.mxu3 %v3665_v4  ;;  %v3675_v4 = vld [vmem:[%s3997_s2 + $0x210] sm:$0xff] }
 0x783   : > { %v1097_v8 = vpop.f32.mrf.mxu0  ;;  %v1110_v10 = vpop.f32.mrf.mxu1 }
 0x784   : > { %v1098_v11 = vadd.f32 %v1097_v8, %v893_v6  ;;  %v1111_v12 = vadd.f32 %v1110_v10, %v894_v7  ;;  %v4272_v8 = vld [vmem:[%s4002_s23 + $0x11] sm:$0xff] }
 0x785   : > { %v3692_v10 = vld [vmem:[%s3997_s2 + $0x298] sm:$0xff] }
 0x786   : > { %v1296_v13 = vmax.f32 %v1098_v11, 0.0  ;;  %v1297_v14 = vmax.f32 %v1111_v12, 0.0  ;;  %v3700_v11 = vld [vmem:[%s3997_s2 + $0x2d8] sm:$0xff] }
 0x788   : > { %v1312_v19 = vpack.c.bf16 %v1296_v13, %v1296_v13  ;;  %v1313_v20 = vpack.c.bf16 %v1297_v14, %v1297_v14  ;;  %v3674_v14 = vld [vmem:[%s3997_s2 + $0x208] sm:$0xff] }
 0x78a   : > { %v1123_v21 = vpop.f32.mrf.mxu2  ;;  %v1136_v23 = vpop.f32.mrf.mxu3  ;;  %2364 = vmatmul.bf16.vlgmr.msrb.gmra.mxu0 %v1312_v19  ;;  %2377 = vmatmul.bf16.vlgmr.msrb.gmra.mxu1 %v1313_v20  ;;  %v3691_v20 = vld [vmem:[%s3997_s2 + $0x290] sm:$0xff] }
 0x78b   : > { %v1124_v24 = vadd.f32 %v1123_v21, %v895_v16  ;;  %v1137_v25 = vadd.f32 %v1136_v23, %v896_v17  ;;  %2460 = vmatpush.bf16.msrb.mxu0 %v3680_v39  ;;  %2473 = vmatpush.bf16.msrb.mxu1 %v3688_v18  ;;  %v1099_v26 = vpop.f32.mrf.mxu0  ;;  %v1112_v27 = vpop.f32.mrf.mxu1  ;;  %v3682_v16 = vld [vmem:[%s3997_s2 + $0x248] sm:$0xff]  ;;  %v901_v17 = vperm.slane %v4272_v8, 0  ;;  %v902_v39 = vperm.slane %v4272_v8, 1  ;;  %v3699_v21 = vld [vmem:[%s3997_s2 + $0x2d0] sm:$0xff] }
 0x78c   : > { %v3673_v27 = vld [vmem:[%s3997_s2 + $0x200] sm:$0xff] }
 0x78d   : > { %v1298_v15 = vmax.f32 %v1124_v24, 0.0  ;;  %v1299_v30 = vmax.f32 %v1137_v25, 0.0 }
 0x78f   : > { %v1314_v33 = vpack.c.bf16 %v1298_v15, %v1298_v15  ;;  %v1315_v34 = vpack.c.bf16 %v1299_v30, %v1299_v30  ;;  %2461 = vmatpush.bf16.msrb.mxu0 %v3679_v28  ;;  %2474 = vmatpush.bf16.msrb.mxu1 %v3687_v29  ;;  %v3681_v28 = vld [vmem:[%s3997_s2 + $0x240] sm:$0xff]  ;;  %v3712_v29 = vld [vmem:[%s3997_s2 + $0x338] sm:$0xff] }
 0x790   : > { %v3720_v15 = vld [vmem:[%s3997_s2 + $0x378] sm:$0xff] }
 0x791   : > { %2390 = vmatmul.bf16.vlgmr.msrb.gmra.mxu2 %v1314_v33  ;;  %2403 = vmatmul.bf16.vlgmr.msrb.gmra.mxu3 %v1315_v34  ;;  %v3698_v33 = vld [vmem:[%s3997_s2 + $0x2c8] sm:$0xff]  ;;  %v903_v34 = vperm.slane %v4272_v8, 2 }
 0x792   : > { %2486 = vmatpush.bf16.msrb.mxu2 %v3696_v31  ;;  %2499 = vmatpush.bf16.msrb.mxu3 %v3704_v32  ;;  %v1125_v40 = vpop.f32.mrf.mxu2  ;;  %v1138_v41 = vpop.f32.mrf.mxu3  ;;  %v3690_v32 = vld [vmem:[%s3997_s2 + $0x288] sm:$0xff] }
 0x793   : > { %2462 = vmatpush.bf16.msrb.mxu0 %v3678_v35  ;;  %2475 = vmatpush.bf16.msrb.mxu1 %v3686_v36  ;;  %v1149_v44 = vpop.f32.mrf.mxu0  ;;  %v1162_v45 = vpop.f32.mrf.mxu1  ;;  %v904_v35 = vperm.slane %v4272_v8, 3  ;;  %v3719_v40 = vld [vmem:[%s3997_s2 + $0x370] sm:$0xff] }
 0x794   : > { %v1150_v48 = vadd.f32 %v1149_v44, %v897_v37  ;;  %v1163_v49 = vadd.f32 %v1162_v45, %v898_v38  ;;  %v3711_v38 = vld [vmem:[%s3997_s2 + $0x330] sm:$0xff]  ;;  %v3697_v44 = vld [vmem:[%s3997_s2 + $0x2c0] sm:$0xff] }
 0x796   : > { %v1300_v50 = vmax.f32 %v1150_v48, 0.0  ;;  %v1301_v51 = vmax.f32 %v1163_v49, 0.0  ;;  %2487 = vmatpush.bf16.msrb.mxu2 %v3695_v42  ;;  %2500 = vmatpush.bf16.msrb.mxu3 %v3703_v43  ;;  %v3689_v43 = vld [vmem:[%s3997_s2 + $0x280] sm:$0xff]  ;;  %v3728_v49 = vld [vmem:[%s3997_s2 + $0x3b8] sm:$0xff] }
 0x797   : > { %2463 = vmatpush.bf16.msrb.mxu0 %v3677_v46  ;;  %2476 = vmatpush.bf16.msrb.mxu1 %v3685_v47 }
 0x798   : > { %v1316_v56 = vpack.c.bf16 %v1300_v50, %v1300_v50  ;;  %v1317_v57 = vpack.c.bf16 %v1301_v51, %v1301_v51  ;;  %v3736_v50 = vld [vmem:[%s3997_s2 + $0x3f8] sm:$0xff] }
 0x79a   : > { %2488 = vmatpush.bf16.msrb.mxu2 %v3694_v52  ;;  %2501 = vmatpush.bf16.msrb.mxu3 %v3702_v53  ;;  %v1175_v60 = vpop.f32.mrf.mxu2  ;;  %v1188_v61 = vpop.f32.mrf.mxu3  ;;  %v3710_v53 = vld [vmem:[%s3997_s2 + $0x328] sm:$0xff] }
 0x79b   : > { %v1176_v0 = vadd.f32 %v1175_v60, %v899_v54  ;;  %v1189_v1 = vadd.f32 %v1188_v61, %v900_v55  ;;  %2416 = vmatmul.bf16.vlgmr.msra.gmra.mxu0 %v1316_v56  ;;  %2429 = vmatmul.bf16.vlgmr.msra.gmra.mxu1 %v1317_v57  ;;  %v1151_v2 = vpop.f32.mrf.mxu0  ;;  %v1164_v3 = vpop.f32.mrf.mxu1  ;;  %v3718_v54 = vld [vmem:[%s3997_s2 + $0x368] sm:$0xff]  ;;  %v3727_v57 = vld [vmem:[%s3997_s2 + $0x3b0] sm:$0xff]  ;;  %v3717_v60 = vld [vmem:[%s3997_s2 + $0x360] sm:$0xff] }
 0x79c   : > { %2464 = vmatpush.bf16.msrb.mxu0 %v3676_v58  ;;  %2477 = vmatpush.bf16.msrb.mxu1 %v3684_v59  ;;  %v3735_v58 = vld [vmem:[%s3997_s2 + $0x3f0] sm:$0xff]  ;;  %v3709_v59 = vld [vmem:[%s3997_s2 + $0x320] sm:$0xff]  ;;  %v3734_v2 = vld [vmem:[%s3997_s2 + $0x3e8] sm:$0xff] }
 0x79d   : > { %v1302_v6 = vmax.f32 %v1176_v0, 0.0  ;;  %v1303_v7 = vmax.f32 %v1189_v1, 0.0  ;;  %v3726_v1 = vld [vmem:[%s3997_s2 + $0x3a8] sm:$0xff]  ;;  %v3708_v3 = vld [vmem:[%s3997_s2 + $0x318] sm:$0xff] }
 0x79e   : > { %2489 = vmatpush.bf16.msrb.mxu2 %v3693_v62  ;;  %2502 = vmatpush.bf16.msrb.mxu3 %v3701_v63 }
 0x79f   : > { %v1318_v12 = vpack.c.bf16 %v1302_v6, %v1302_v6  ;;  %v1319_v13 = vpack.c.bf16 %v1303_v7, %v1303_v7  ;;  %v3733_v6 = vld [vmem:[%s3997_s2 + $0x3e0] sm:$0xff]  ;;  %v3707_v7 = vld [vmem:[%s3997_s2 + $0x310] sm:$0xff] }
 0x7a0   : > { %2465 = vmatpush.bf16.msrb.mxu0 %v3675_v4  ;;  %2478 = vmatpush.bf16.msrb.mxu1 %v3683_v5  ;;  %v3716_v4 = vld [vmem:[%s3997_s2 + $0x358] sm:$0xff]  ;;  %v3725_v5 = vld [vmem:[%s3997_s2 + $0x3a0] sm:$0xff] }
 0x7a1   : > { %2442 = vmatmul.bf16.vlgmr.msra.gmra.mxu2 %v1318_v12  ;;  %2455 = vmatmul.bf16.vlgmr.msra.gmra.mxu3 %v1319_v13  ;;  %v906_v12 = vperm.slane %v4272_v8, 5 }
 0x7a2   : > { %2490 = vmatpush.bf16.msrb.mxu2 %v3692_v10  ;;  %2503 = vmatpush.bf16.msrb.mxu3 %v3700_v11  ;;  %v1177_v18 = vpop.f32.mrf.mxu2  ;;  %v1190_v19 = vpop.f32.mrf.mxu3  ;;  %v3715_v10 = vld [vmem:[%s3997_s2 + $0x350] sm:$0xff]  ;;  %v905_v11 = vperm.slane %v4272_v8, 4 }
 0x7a3   : > { %v1201_v23 = vpop.f32.mrf.mxu0  ;;  %v1214_v24 = vpop.f32.mrf.mxu1  ;;  %v3732_v18 = vld [vmem:[%s3997_s2 + $0x3d8] sm:$0xff]  ;;  %v3706_v19 = vld [vmem:[%s3997_s2 + $0x308] sm:$0xff] }
 0x7a4   : > { %2466 = vmatpush.bf16.msrb.mxu0 %v3674_v14  ;;  %2479 = vmatpush.bf16.msrb.mxu1 %v3682_v16  ;;  %v1202_v25 = vadd.f32 %v1201_v23, %v901_v17  ;;  %v1215_v26 = vadd.f32 %v1214_v24, %v902_v39  ;;  %v3724_v39 = vld [vmem:[%s3997_s2 + $0x398] sm:$0xff]  ;;  %v3723_v24 = vld [vmem:[%s3997_s2 + $0x390] sm:$0xff] }
 0x7a6   : > { %v1304_v30 = vmax.f32 %v1202_v25, 0.0  ;;  %v1305_v31 = vmax.f32 %v1215_v26, 0.0  ;;  %2491 = vmatpush.bf16.msrb.mxu2 %v3691_v20  ;;  %2504 = vmatpush.bf16.msrb.mxu3 %v3699_v21  ;;  %v3714_v20 = vld [vmem:[%s3997_s2 + $0x348] sm:$0xff]  ;;  %v3731_v25 = vld [vmem:[%s3997_s2 + $0x3d0] sm:$0xff]  ;;  %v907_v26 = vperm.slane %v4272_v8, 6 }
 0x7a8   : > { %v1320_v36 = vpack.c.bf16 %v1304_v30, %v1304_v30  ;;  %v1321_v37 = vpack.c.bf16 %v1305_v31, %v1305_v31  ;;  %2467 = vmatpush.bf16.msrb.mxu0 %v3673_v27  ;;  %2480 = vmatpush.bf16.msrb.mxu1 %v3681_v28  ;;  %v908_v27 = vperm.slane %v4272_v8, 7  ;;  %v3705_v28 = vld [vmem:[%s3997_s2 + $0x300] sm:$0xff] }
 0x7aa   : > { %2492 = vmatpush.bf16.msrb.mxu2 %v3690_v32  ;;  %2505 = vmatpush.bf16.msrb.mxu3 %v3698_v33  ;;  %v1227_v41 = vpop.f32.mrf.mxu2  ;;  %v1240_v42 = vpop.f32.mrf.mxu3  ;;  %v3722_v33 = vld [vmem:[%s3997_s2 + $0x388] sm:$0xff] }
 0x7ab   : > { %v1228_v45 = vadd.f32 %v1227_v41, %v903_v34  ;;  %v1241_v46 = vadd.f32 %v1240_v42, %v904_v35  ;;  %2468 = vmatmul.bf16.vlgmr.msrb.gmra.mxu0 %v1320_v36  ;;  %2481 = vmatmul.bf16.vlgmr.msrb.gmra.mxu1 %v1321_v37  ;;  %v1203_v47 = vpop.f32.mrf.mxu0  ;;  %v1216_v48 = vpop.f32.mrf.mxu1  ;;  %v3730_v34 = vld [vmem:[%s3997_s2 + $0x3c8] sm:$0xff] }
 0x7ac   : > { %2512 = vmatpush.bf16.msra.mxu0 %v3712_v29  ;;  %2525 = vmatpush.bf16.msra.mxu1 %v3720_v15  ;;  %v3713_v29 = vld [vmem:[%s3997_s2 + $0x340] sm:$0xff] }
 0x7ad   : > { %v1306_v51 = vmax.f32 %v1228_v45, 0.0  ;;  %v1307_v52 = vmax.f32 %v1241_v46, 0.0 }
 0x7ae   : > { %2493 = vmatpush.bf16.msrb.mxu2 %v3689_v43  ;;  %2506 = vmatpush.bf16.msrb.mxu3 %v3697_v44 }
 0x7af   : > { %v1322_v55 = vpack.c.bf16 %v1306_v51, %v1306_v51  ;;  %v1323_v56 = vpack.c.bf16 %v1307_v52, %v1307_v52 }
 0x7b0   : > { %2513 = vmatpush.bf16.msra.mxu0 %v3711_v38  ;;  %2526 = vmatpush.bf16.msra.mxu1 %v3719_v40  ;;  %v3721_v38 = vld [vmem:[%s3997_s2 + $0x380] sm:$0xff] }
 0x7b1   : > { %2494 = vmatmul.bf16.vlgmr.msrb.gmra.mxu2 %v1322_v55  ;;  %2507 = vmatmul.bf16.vlgmr.msrb.gmra.mxu3 %v1323_v56  ;;  %v3729_v40 = vld [vmem:[%s3997_s2 + $0x3c0] sm:$0xff]  ;;  %v3792_v55 = vld [vmem:[%s4002_s23 + $0x19] ss:$0 sm:$0xff]  ;;  %s3556_s2 = sshll.u32 %s3940_s28, 3 }
 0x7b2   : > { %2538 = vmatpush.bf16.msra.mxu2 %v3728_v49  ;;  %2551 = vmatpush.bf16.msra.mxu3 %v3736_v50  ;;  %v1229_v61 = vpop.f32.mrf.mxu2  ;;  %v1242_v62 = vpop.f32.mrf.mxu3  ;;  %s2661_s30 = scalar_lea.hbm %s4384_s7, %s3556_s2 }
 0x7b3   : > { %v1253_v63 = vpop.f32.mrf.mxu0  ;;  %v1266_v0 = vpop.f32.mrf.mxu1  ;;  %s2665_s28 = sshll.u32 %s2661_s30, 4  ;;  %s2666_s28 = int_to_ptr.hbm [resolvable:$true] %s2665_s28 }
 0x7b4   : > { %2514 = vmatpush.bf16.msra.mxu0 %v3710_v53  ;;  %2527 = vmatpush.bf16.msra.mxu1 %v3718_v54  ;;  %v1254_v21 = vadd.f32 %v1253_v63, %v905_v11  ;;  %v1267_v23 = vadd.f32 %v1266_v0, %v906_v12  ;;  %s3828_s15 = sshra.s32 %s2666_s28, 4  ;;  %s3829_s15 = int_to_ptr.hbm [resolvable:$true] %s3828_s15 }
 0x7b5   : > { %s3830_s17 = scalar_lea.hbm %s3829_s15, 8  ;;  %p3835_p1 = scmp.lt.s32.totalorder %s3829_s15, %s4384_s7 }
 0x7b6   : > { %2539 = vmatpush.bf16.msra.mxu2 %v3727_v57  ;;  %2552 = vmatpush.bf16.msra.mxu3 %v3735_v58  ;;  %v1308_v15 = vmax.f32 %v1254_v21, 0.0  ;;  %v1309_v30 = vmax.f32 %v1267_v23, 0.0  ;;  %p3831_p12 = scmp.ne.s32.totalorder %s3829_s15, %s3830_s17  ;;  %p3836_p2 = scmp.lt.s32.totalorder %s3834_s18, %s3830_s17 }
 0x7b8   : > { %2515 = vmatpush.bf16.msra.mxu0 %v3709_v59  ;;  %2528 = vmatpush.bf16.msra.mxu1 %v3717_v60  ;;  %v1324_v37 = vpack.c.bf16 %v1308_v15, %v1308_v15  ;;  %v1325_v8 = vpack.c.bf16 %v1309_v30, %v1309_v30  ;;  %p3832_p13 = pnand %p3831_p12, %p3957_p5  ;;  %p3837_p3 = por %p3836_p2, %p3835_p1 }
 0x7ba   : > { %2540 = vmatpush.bf16.msra.mxu2 %v3726_v1  ;;  %2553 = vmatpush.bf16.msra.mxu3 %v3734_v2  ;;  %v1279_v13 = vpop.f32.mrf.mxu2  ;;  %v1292_v14 = vpop.f32.mrf.mxu3  ;;  %p3833_p0 = pneg %p3832_p13 }
 0x7bb   : > { %v1255_v16 = vpop.f32.mrf.mxu0  ;;  %v1268_v17 = vpop.f32.mrf.mxu1  ;;  %v1280_v35 = vadd.f32 %v1279_v13, %v907_v26  ;;  %v1293_v36 = vadd.f32 %v1292_v14, %v908_v27 }
 0x7bc   : > { %2516 = vmatpush.bf16.msra.mxu0 %v3708_v3  ;;  %2529 = vmatpush.bf16.msra.mxu1 %v3716_v4  ;;  %p3838_p4 = pnand %p3837_p3, %p3833_p0 }
 0x7bd   : > { %v1310_v41 = vmax.f32 %v1280_v35, 0.0  ;;  %v1311_v42 = vmax.f32 %v1293_v36, 0.0 }
 0x7be   : > { %2541 = vmatpush.bf16.msra.mxu2 %v3725_v5  ;;  %2554 = vmatpush.bf16.msra.mxu3 %v3733_v6 }
 0x7bf   : > { %v1326_v43 = vpack.c.bf16 %v1310_v41, %v1310_v41  ;;  %v1327_v44 = vpack.c.bf16 %v1311_v42, %v1311_v42 }
 0x7c0   : > { %2517 = vmatpush.bf16.msra.mxu0 %v3707_v7  ;;  %2530 = vmatpush.bf16.msra.mxu1 %v3715_v10 }
 0x7c2   : > { %2542 = vmatpush.bf16.msra.mxu2 %v3724_v39  ;;  %2555 = vmatpush.bf16.msra.mxu3 %v3732_v18  ;;  %v1281_v31 = vpop.f32.mrf.mxu2  ;;  %v1294_v32 = vpop.f32.mrf.mxu3 }
 0x7c4   : > { %2518 = vmatpush.bf16.msra.mxu0 %v3706_v19  ;;  %2531 = vmatpush.bf16.msra.mxu1 %v3714_v20 }
 0x7c6   : > { %2543 = vmatpush.bf16.msra.mxu2 %v3723_v24  ;;  %2556 = vmatpush.bf16.msra.mxu3 %v3731_v25 }
 0x7c8   : > { %2519 = vmatpush.bf16.msra.mxu0 %v3705_v28  ;;  %2532 = vmatpush.bf16.msra.mxu1 %v3713_v29 }
 0x7ca   : > { %2544 = vmatpush.bf16.msra.mxu2 %v3722_v33  ;;  %2557 = vmatpush.bf16.msra.mxu3 %v3730_v34 }
 0x7cb   : > { %2520 = vmatmul.bf16.vlgmr.msra.gmra.mxu0 %v1324_v37  ;;  %2533 = vmatmul.bf16.vlgmr.msra.gmra.mxu1 %v1325_v8 }
 0x7ce   : > { %2545 = vmatpush.bf16.msra.mxu2 %v3721_v38  ;;  %2558 = vmatpush.bf16.msra.mxu3 %v3729_v40  ;;  %v3738_v38 = vld [vmem:[%s3992_s12 + $0x8] sm:$0xff]  ;;  %v3737_v40 = vld [vmem:[%s3992_s12] sm:$0xff]  ;;  %s4400_s12 = sand.u32 1, %s3868_s25  }
 0x7cf   : > { %2617 = vmatpush.bf16.msrb.mxu0 %v3738_v38  ;;  %s2651_s13 = scalar_lea.sflag [#allocation4], %s4400_s12 }
 0x7d1   : > { %2546 = vmatmul.bf16.vlgmr.msra.gmra.mxu2 %v1326_v43  ;;  %2559 = vmatmul.bf16.vlgmr.msra.gmra.mxu3 %v1327_v44 }
 0x7d3   : > { %2618 = vmatpush.bf16.msrb.mxu0 %v3737_v40 }
 0x807   : > { %v2365_v45 = vpop.f32.mrf.mxu0  ;;  %v2378_v46 = vpop.f32.mrf.mxu1 }
 0x808   : > { %v2366_v58 = vadd.f32 %v3792_v55, %v2365_v45 }
 0x80a   : > { %v2379_v61 = vadd.f32 %v2378_v46, %v2366_v58 }
 0x80f   : > { %v2367_v47 = vpop.f32.mrf.mxu0  ;;  %v2380_v48 = vpop.f32.mrf.mxu1 }
 0x814   : > { %v2391_v49 = vpop.f32.mrf.mxu2  ;;  %v2404_v50 = vpop.f32.mrf.mxu3 }
 0x815   : > { %v2392_v0 = vadd.f32 %v2391_v49, %v2379_v61 }
 0x817   : > { %v2405_v3 = vadd.f32 %v2404_v50, %v2392_v0 }
 0x818   : > { %v2417_v51 = vpop.f32.mrf.mxu0  ;;  %v2430_v52 = vpop.f32.mrf.mxu1 }
 0x819   : > { %v2418_v6 = vadd.f32 %v2417_v51, %v2405_v3 }
 0x81b   : > { %v2431_v11 = vadd.f32 %v2430_v52, %v2418_v6  ;;  %v3793_v52 = vld [vmem:[%s4002_s23 + $0x1a] ss:$0 sm:$0xff] }
 0x81c   : > { %v2393_v53 = vpop.f32.mrf.mxu2  ;;  %v2406_v54 = vpop.f32.mrf.mxu3 }
 0x820   : > { %v2419_v56 = vpop.f32.mrf.mxu0  ;;  %v2432_v57 = vpop.f32.mrf.mxu1 }
 0x824   : > { %v2443_v59 = vpop.f32.mrf.mxu2  ;;  %v2456_v60 = vpop.f32.mrf.mxu3 }
 0x825   : > { %v2444_v12 = vadd.f32 %v2443_v59, %v2431_v11 }
 0x827   : > { %v2457_v13 = vadd.f32 %v2456_v60, %v2444_v12 }
 0x828   : > { %v2469_v62 = vpop.f32.mrf.mxu0  ;;  %v2482_v63 = vpop.f32.mrf.mxu1 }
 0x829   : > { %v2470_v17 = vadd.f32 %v2469_v62, %v2457_v13 }
 0x82b   : > { %v2483_v39 = vadd.f32 %v2482_v63, %v2470_v17 }
 0x82c   : > { %v2445_v1 = vpop.f32.mrf.mxu2  ;;  %v2458_v2 = vpop.f32.mrf.mxu3 }
 0x830   : > { %v2471_v4 = vpop.f32.mrf.mxu0  ;;  %v2484_v5 = vpop.f32.mrf.mxu1 }
 0x834   : > { %v2495_v7 = vpop.f32.mrf.mxu2  ;;  %v2508_v10 = vpop.f32.mrf.mxu3 }
 0x835   : > { %v2496_v20 = vadd.f32 %v2495_v7, %v2483_v39 }
 0x837   : > { %v2509_v21 = vadd.f32 %v2508_v10, %v2496_v20 }
 0x83c   : > { %v2497_v14 = vpop.f32.mrf.mxu2  ;;  %v2510_v16 = vpop.f32.mrf.mxu3 }
 0x848   : > { %v2521_v18 = vpop.f32.mrf.mxu0  ;;  %v2534_v19 = vpop.f32.mrf.mxu1 }
 0x849   : > { %v2522_v23 = vadd.f32 %v2521_v18, %v2509_v21 }
 0x84b   : > { %v2535_v26 = vadd.f32 %v2534_v19, %v2522_v23 }
 0x850   : > { %v2523_v24 = vpop.f32.mrf.mxu0  ;;  %v2536_v25 = vpop.f32.mrf.mxu1 }
 0x854   : > { %v2547_v27 = vpop.f32.mrf.mxu2  ;;  %v2560_v28 = vpop.f32.mrf.mxu3 }
 0x855   : > { %v2548_v29 = vadd.f32 %v2547_v27, %v2535_v26 }
 0x857   : > { %v2561_v15 = vadd.f32 %v2560_v28, %v2548_v29 }
 0x859   : > { %v2564_v30 = vadd.f32 %v2561_v15, %v4111_v22 }
 0x85b   : > { %v2565_v31 = vsel %vm383_vm1, %v2564_v30, 0.0 }
 0x85c   : > { %v2549_v32 = vpop.f32.mrf.mxu2  ;;  %v2562_v33 = vpop.f32.mrf.mxu3  ;;  %2566 = vadd.xlane.f32.xlu2 %v2565_v31 }
 0x8cf   : > { %v2567_v34 = vpop.xlane.xlu2 %2566 }
 0x8d0   : > { %v2568_v35 = vmul.f32 %v2567_v34, %v4010_v9 }
 0x8d2   : > { %v2569_v36 = vsub.f32 %v2564_v30, %v2568_v35 }
 0x8d4   : > { %v2570_v37 = vmul.f32 %v2569_v36, %v2569_v36 }
 0x8d6   : > { %v2571_v8 = vsel %vm383_vm1, %v2570_v37, 0.0 }
 0x8d7   : > { %2572 = vadd.xlane.f32.xlu0 %v2571_v8 }
 0x94a   : > { %v2573_v41 = vpop.xlane.xlu0 %2572 }
 0x94b   : > { %v2574_v22 = vmul.f32 %v2573_v41, %v4010_v9 }
 0x94d   : > { %v2575_v42 = vadd.f32 1e-05, %v2574_v22 }
 0x94f   : > { %3808 = vrsqrt.f32 %v2575_v42  ;;  %vm2582_vm6 = vweird.f32 %v2575_v42 }
 0x955   : > { %v3809_v43 = vpop.eup %3808 }
 0x956   : > { %v2577_v44 = vmul.f32 %v3809_v43, %v2575_v42  ;;  %vm2583_vm5 = vweird.f32 %v3809_v43 }
 0x957   : > { %vm2584_vm7 = vmor %vm2582_vm6, %vm2583_vm5 }
 0x958   : > { %v2578_v45 = vmul.f32 %v3809_v43, %v2577_v44 }
 0x95a   : > { %v2579_v46 = vmul.f32 0.5, %v2578_v45 }
 0x95c   : > { %v2580_v47 = vsub.f32 1.5, %v2579_v46 }
 0x95e   : > { %v2581_v48 = vmul.f32 %v3809_v43, %v2580_v47 }
 0x960   : > { %v2585_v49 = vsel %vm2584_vm7, %v3809_v43, %v2581_v48 }
 0x961   : > { %v2586_v50 = vmul.f32 %v2585_v49, %v2569_v36 }
 0x963   : > { %v2587_v51 = vpack.c.bf16 %v2586_v50, %v2586_v50 }
 0x965   : > { %3554 = vmatmul.msk.bf16.vlgmr.msrb.gmra.mxu0 %vm383_vm1, %v2587_v51 }
 0x9e2   : > { %v2620_v53 = vpop.f32.mrf.mxu0 }
 0x9e3   : > { %v2621_v9 = vadd.f32 %v3793_v52, %v2620_v53 }
 0x9e5   : > { %v2624_v54 = vsel %vm383_vm1, %v2621_v9, -inf }
 0x9e6   : > { %2625 = vmax.xlane.f32.xlu1 %v2624_v54 }
 0x9ea   : > { %v2622_v55 = vpop.f32.mrf.mxu0 }
 0xa59   : > { %v2626_v56 = vpop.xlane.xlu1 %2625 }
 0xa5a   : > { %v2627_v57 = vsub.f32 %v2621_v9, %v2626_v56 }
 0xa5c   : > { %v2628_v58 = vmul.f32 1.442695, %v2627_v57 }
 0xa5e   : > { %3810 = vpow2.f32 %v2628_v58 }
 0xa64   : > { %v3811_v59 = vpop.eup %3810 }
 0xa65   : > { %v2630_v60 = vsel %vm383_vm1, %v3811_v59, 0.0 }
 0xa66   : > { %2631 = vadd.xlane.f32.xlu2 %v2630_v60 }
 0xad9   : > { %v2632_v61 = vpop.xlane.xlu2 %2631 }
 0xada   : > { %3812 = vrcp.f32 %v2632_v61  ;;  %v2644_v1 = vand.u32 2147483648, %v2632_v61  ;;  %v2642_v3 = vand.u32 2147483647, %v2632_v61  ;;  %vm2638_vm9 = vweird.f32 %v2632_v61 }
 0xadc   : > { %v2645_v5 = vor.u32 1.1754944e-38, %v2644_v1  ;;  %vm2643_vm11 = vcmp.eq.f32.partialorder %v2642_v3, 8.507059e+37 }
 0xae0   : > { %v3813_v62 = vpop.eup %3812 }
 0xae1   : > { %v2634_v63 = vmul.f32 %v3813_v62, %v2632_v61  ;;  %vm2639_vm8 = vweird.f32 %v3813_v62 }
 0xae2   : > { %vm2640_vm10 = vmor %vm2638_vm9, %vm2639_vm8 }
 0xae3   : > { %v2635_v0 = vsub.f32 1.0, %v2634_v63 }
 0xae5   : > { %v2636_v2 = vmul.f32 %v3813_v62, %v2635_v0 }
 0xae7   : > { %v2637_v4 = vadd.f32 %v3813_v62, %v2636_v2 }
 0xae9   : > { %v2641_v6 = vsel %vm2640_vm10, %v3813_v62, %v2637_v4 }
 0xaea   : > { %v2646_v7 = vsel %vm2643_vm11, %v2645_v5, %v2641_v6 }
 0xaeb   : > { %v2647_v10 = vmul.f32 %v3811_v59, %v2646_v7 }
 0xaed   : > { %2648 = vst.msk [vmem:[#allocation2] sm:$0xff] %vm383_vm1, %v2647_v10 }
 0xaee   : > { %2649 = vst.msk [vmem:[%s344_s8] sm:$0xff] %vm383_vm1, %v2647_v10 }
 0xaef   : > { %3841 = shalt.err (!%p3838_p4)
}
 0xaf0   : > { %3741 = dma.vmem_to_hbm [thread:$0]  (%p3957_p5), %s2664_s10, 128, %s2666_s28, %s2651_s13  }
 0xaf1 PF: > { %s4401_s14 = sld [smem:[#allocation6_spill]]  ;;  %p3747_p7 = scmp.ge.s32.totalorder %s3876_s27, 2 }
 0xaf3   : > { %p3744_p8 = pnand %p3747_p7, %p3961_p6 }
 0xaf5   : > { %p3745_p9 = pneg %p3744_p8 }
 0xaf7   : > { %s2677_s23 = sand.u32 1, %s4401_s14  }
 0xaf8   : > { %s2678_s8 = scalar_lea.sflag [#allocation4], %s2677_s23 }
 0xaf9   : > { %3859 = dma.done.wait (%p3745_p9), %s2678_s8, 128  }
 0xafa   : > { %3861 = vsyncadd (%p3745_p9), %s2678_s8, 4294967168  ;;  %s4403_s27 = sld [smem:[#allocation8_spill]]  ;;  %s4406_s24 = smov %s3868_s25 }
 0xafb   : > { %s4404_s21 = sld [smem:[#allocation7_spill]] }
 0xafc   : > { %s4405_s26 = sld [smem:[#allocation9_spill]] }
 0xb00   : > { %p17_p10 = scmp.ge.s32.totalorder %s4403_s27, 4  }
 0xb01   : > { %s4407_s25 = smov %s4404_s21 }
 0xb02   :  { %19 = sbr.rel (!%p17_p10) target bundleno = 5 (0x5), region = 108 }
 0xb07   :  { %2684 = vsyncpa [#allocation4], 1 }
 0xb08   :  { %2686 = vsyncpa [#allocation4 + $0x1], 1 }

</bundles_post_ra>
